<compile_context>
chip_gen: v7x
topology: tpu7x:2x2x1
jax: 0.10.0
libtpu: 0.0.40
codegen_flags: <defaults>
</compile_context>

<pallas_src>
import jax
import jax.numpy as jnp
from jax.experimental import pallas as pl
from jax.experimental.pallas import tpu as pltpu

hidden_dim = 16
input_dim = 1
num_layers = 2   # kernel hard-codes the 2-layer stack, matching the module
output_dim = 1


def lstm_kernel(x_ref,       # (T, B)       time-major, lane-dense (D_in==1 squeezed)
                w_ih0_ref,   # (4H, 1)      layer-0 input weights (column)
                w_hh0_ref,   # (4H, H)      layer-0 recurrent weights
                b0_ref,      # (4H, 1)      b_ih0 + b_hh0
                w_l1_ref,    # (4H, 2H)     fused [W_ih1 | W_hh1]
                b1_ref,      # (4H, 1)      b_ih1 + b_hh1
                w_fc_ref,    # (O, H)
                b_fc_ref,    # (O, 1)
                out_ref):    # (O, B)
    T, B = x_ref.shape
    H = w_hh0_ref.shape[1]

    x = x_ref[...]           # (T, B) — one lane-dense load
    w_ih0 = w_ih0_ref[...]   # (4H, 1)
    w_hh0 = w_hh0_ref[...]   # (4H, H)
    w_l1 = w_l1_ref[...]     # (4H, 2H)
    b1 = b1_ref[...]         # (4H, 1)

    # Hoisted layer-0 input projection (+ bias), computed once before the loop:
    # (T, 1, B) * (1, 4H, 1) + (1, 4H, 1) -> (T, 4H, B).
    x_proj = x[:, None, :] * w_ih0[None, :, :] + b0_ref[...][None, :, :]

    def gate_act(gates, c):
        # gates: (4H, B); slices are sublane-aligned (H is a multiple of 8),
        # i.e. plain vreg selection — no lane relayout.  PyTorch order [i,f,g,o].
        i = jax.nn.sigmoid(gates[0 * H:1 * H, :])
        f = jax.nn.sigmoid(gates[1 * H:2 * H, :])
        g = jnp.tanh(gates[2 * H:3 * H, :])
        o = jax.nn.sigmoid(gates[3 * H:4 * H, :])
        c_new = f * c + i * g
        h_new = o * jnp.tanh(c_new)
        return h_new, c_new

    zeros = jnp.zeros((H, B), jnp.float32)
    h0, c0, h1, c1 = zeros, zeros, zeros, zeros

    # Fully unrolled time loop (T is small and static): static x_proj[t] slices,
    # whole recurrence visible to the scheduler so layer-1 EUP work of step t
    # overlaps layer-0 MXU work of step t+1.
    for t in range(T):
        # Layer 0: only the recurrent dot remains on the serial path.
        g0 = x_proj[t] + jnp.dot(w_hh0, h0, preferred_element_type=jnp.float32)
        h0, c0 = gate_act(g0, c0)
        # Layer 1: single fused dot  [W_ih1 | W_hh1] @ [h0 ; h1].
        g1 = jnp.dot(w_l1, jnp.concatenate([h0, h1], axis=0),
                     preferred_element_type=jnp.float32) + b1
        h1, c1 = gate_act(g1, c1)

    # fc(hn[last layer]) in the transposed layout: (O, H) @ (H, B) + (O, 1) -> (O, B).
    out_ref[...] = (jnp.dot(w_fc_ref[...], h1, preferred_element_type=jnp.float32)
                    + b_fc_ref[...]).astype(out_ref.dtype)


def init_params(key):
    """PyTorch-style uniform(-1/sqrt(H), 1/sqrt(H)) init, deterministic."""
    k = 1.0 / jnp.sqrt(jnp.float32(hidden_dim))
    keys = jax.random.split(key, 11)

    def u(kk, shape):
        return jax.random.uniform(kk, shape, jnp.float32, -k, k)

    p = {
        # layer 0
        "w_ih0": u(keys[0], (4 * hidden_dim, input_dim)),
        "w_hh0": u(keys[1], (4 * hidden_dim, hidden_dim)),
        "b_ih0": u(keys[2], (4 * hidden_dim,)),
        "b_hh0": u(keys[3], (4 * hidden_dim,)),
        # layer 1
        "w_ih1": u(keys[4], (4 * hidden_dim, hidden_dim)),
        "w_hh1": u(keys[5], (4 * hidden_dim, hidden_dim)),
        "b_ih1": u(keys[6], (4 * hidden_dim,)),
        "b_hh1": u(keys[7], (4 * hidden_dim,)),
        # fc
        "w_fc": u(keys[8], (output_dim, hidden_dim)),
        "b_fc": u(keys[9], (output_dim,)),
    }
    return p


def lstm_forward(x, p):
    """x: (B, T, input_dim) float32 -> (B, output_dim) float32."""
    B, T, D = x.shape
    assert D == input_dim
    H = hidden_dim

    # Lane-dense, time-major input: drop the size-1 input dim -> (T, B).
    x_tb = jnp.transpose(x[..., 0], (1, 0))

    w_ih0 = p["w_ih0"]                                           # (4H, 1)
    w_hh0 = p["w_hh0"]                                           # (4H, H)
    b0 = (p["b_ih0"] + p["b_hh0"]).reshape(4 * H, 1)             # (4H, 1)
    # Fused layer-1 weight: one (4H, 2H) matrix for [h0 ; h1].
    w_l1 = jnp.concatenate([p["w_ih1"], p["w_hh1"]], axis=1)     # (4H, 2H)
    b1 = (p["b_ih1"] + p["b_hh1"]).reshape(4 * H, 1)             # (4H, 1)
    w_fc = p["w_fc"]                                             # (O, H)
    b_fc = p["b_fc"].reshape(output_dim, 1)                      # (O, 1)

    vmem = pl.BlockSpec(memory_space=pltpu.MemorySpace.VMEM)
    out_ob = pl.pallas_call(
        lstm_kernel,
        out_shape=jax.ShapeDtypeStruct((output_dim, B), jnp.float32),
        in_specs=[vmem] * 8,
        out_specs=vmem,
    )(x_tb, w_ih0, w_hh0, b0, w_l1, b1, w_fc, b_fc)

    return out_ob.T                                              # (B, O)


if __name__ == "__main__":
    key = jax.random.PRNGKey(0)
    k_param, k_x = jax.random.split(key)

    params = init_params(k_param)

    batch, seq = 2, 8
    x = jax.random.normal(k_x, (batch, seq, input_dim), jnp.float32)

    out = lstm_forward(x, params)
    out = jax.block_until_ready(out)
    assert out.shape == (batch, output_dim)
    assert bool(jnp.all(jnp.isfinite(out)))
    print("KERNEL_OK")
</pallas_src>

<mosaic_0001>
module attributes {stable_mosaic.version = 11 : i64} {
  func.func @lstm_kernel(%arg0: memref<8x2xf32, #tpu.memory_space<vmem>>, %arg1: memref<64x1xf32, #tpu.memory_space<vmem>>, %arg2: memref<64x16xf32, #tpu.memory_space<vmem>>, %arg3: memref<64x1xf32, #tpu.memory_space<vmem>>, %arg4: memref<64x32xf32, #tpu.memory_space<vmem>>, %arg5: memref<64x1xf32, #tpu.memory_space<vmem>>, %arg6: memref<1x16xf32, #tpu.memory_space<vmem>>, %arg7: memref<1x1xf32, #tpu.memory_space<vmem>>, %arg8: memref<1x2xf32, #tpu.memory_space<vmem>>) attributes {dimension_semantics = [], scalar_prefetch = 0 : i64, scratch_operands = 0 : i64, tpu.core_type = #tpu.core_type<tc>} {
    %c0 = arith.constant 0 : index
    %c0_0 = arith.constant 0 : index
    %0 = vector.load %arg0[%c0, %c0_0] : memref<8x2xf32, #tpu.memory_space<vmem>>, vector<8x2xf32>
    %c0_1 = arith.constant 0 : index
    %c0_2 = arith.constant 0 : index
    %1 = vector.load %arg1[%c0_1, %c0_2] : memref<64x1xf32, #tpu.memory_space<vmem>>, vector<64x1xf32>
    %c0_3 = arith.constant 0 : index
    %c0_4 = arith.constant 0 : index
    %2 = vector.load %arg2[%c0_3, %c0_4] : memref<64x16xf32, #tpu.memory_space<vmem>>, vector<64x16xf32>
    %c0_5 = arith.constant 0 : index
    %c0_6 = arith.constant 0 : index
    %3 = vector.load %arg4[%c0_5, %c0_6] : memref<64x32xf32, #tpu.memory_space<vmem>>, vector<64x32xf32>
    %c0_7 = arith.constant 0 : index
    %c0_8 = arith.constant 0 : index
    %4 = vector.load %arg5[%c0_7, %c0_8] : memref<64x1xf32, #tpu.memory_space<vmem>>, vector<64x1xf32>
    %5 = vector.shape_cast %0 : vector<8x2xf32> to vector<8x1x2xf32>
    %6 = vector.shape_cast %1 : vector<64x1xf32> to vector<1x64x1xf32>
    %7 = vector.broadcast %5 : vector<8x1x2xf32> to vector<8x64x2xf32>
    %8 = vector.broadcast %6 : vector<1x64x1xf32> to vector<8x64x2xf32>
    %9 = arith.mulf %7, %8 : vector<8x64x2xf32>
    %c0_9 = arith.constant 0 : index
    %c0_10 = arith.constant 0 : index
    %10 = vector.load %arg3[%c0_9, %c0_10] : memref<64x1xf32, #tpu.memory_space<vmem>>, vector<64x1xf32>
    %11 = vector.shape_cast %10 : vector<64x1xf32> to vector<1x64x1xf32>
    %12 = vector.broadcast %11 : vector<1x64x1xf32> to vector<8x64x2xf32>
    %13 = arith.addf %9, %12 : vector<8x64x2xf32>
    %cst = arith.constant 0.000000e+00 : f32
    %14 = vector.broadcast %cst : f32 to vector<16x2xf32>
    %15 = vector.extract_strided_slice %13 {offsets = [0, 0, 0], sizes = [1, 64, 2], strides = [1, 1, 1]} : vector<8x64x2xf32> to vector<1x64x2xf32>
    %16 = vector.shape_cast %15 : vector<1x64x2xf32> to vector<64x2xf32>
    %cst_11 = arith.constant dense<0.000000e+00> : vector<64x2xf32>
    %17 = tpu.matmul %2, %14, %cst_11 {dimension_numbers = #tpu.dot_dimension_numbers<[1], [0], [0], [1], [0, 0, 1, 1], [], []>} : vector<64x16xf32>, vector<16x2xf32>, vector<64x2xf32> -> vector<64x2xf32>
    %18 = arith.addf %16, %17 : vector<64x2xf32>
    %19 = vector.extract_strided_slice %18 {offsets = [0, 0], sizes = [16, 2], strides = [1, 1]} : vector<64x2xf32> to vector<16x2xf32>
    %20 = arith.negf %19 : vector<16x2xf32>
    %21 = math.exp %20 : vector<16x2xf32>
    %cst_12 = arith.constant 1.000000e+00 : f32
    %22 = vector.broadcast %cst_12 : f32 to vector<16x2xf32>
    %23 = arith.addf %22, %21 : vector<16x2xf32>
    %24 = arith.divf %22, %23 : vector<16x2xf32>
    %25 = vector.extract_strided_slice %18 {offsets = [16, 0], sizes = [16, 2], strides = [1, 1]} : vector<64x2xf32> to vector<16x2xf32>
    %26 = arith.negf %25 : vector<16x2xf32>
    %27 = math.exp %26 : vector<16x2xf32>
    %cst_13 = arith.constant 1.000000e+00 : f32
    %28 = vector.broadcast %cst_13 : f32 to vector<16x2xf32>
    %29 = arith.addf %28, %27 : vector<16x2xf32>
    %30 = arith.divf %28, %29 : vector<16x2xf32>
    %31 = vector.extract_strided_slice %18 {offsets = [32, 0], sizes = [16, 2], strides = [1, 1]} : vector<64x2xf32> to vector<16x2xf32>
    %32 = math.tanh %31 : vector<16x2xf32>
    %33 = vector.extract_strided_slice %18 {offsets = [48, 0], sizes = [16, 2], strides = [1, 1]} : vector<64x2xf32> to vector<16x2xf32>
    %34 = arith.negf %33 : vector<16x2xf32>
    %35 = math.exp %34 : vector<16x2xf32>
    %cst_14 = arith.constant 1.000000e+00 : f32
    %36 = vector.broadcast %cst_14 : f32 to vector<16x2xf32>
    %37 = arith.addf %36, %35 : vector<16x2xf32>
    %38 = arith.divf %36, %37 : vector<16x2xf32>
    %39 = arith.mulf %30, %14 : vector<16x2xf32>
    %40 = arith.mulf %24, %32 : vector<16x2xf32>
    %41 = arith.addf %39, %40 : vector<16x2xf32>
    %42 = math.tanh %41 : vector<16x2xf32>
    %43 = arith.mulf %38, %42 : vector<16x2xf32>
    %44 = tpu.concatenate %43, %14 in 0 : vector<16x2xf32>, vector<16x2xf32> -> vector<32x2xf32>
    %cst_15 = arith.constant dense<0.000000e+00> : vector<64x2xf32>
    %45 = tpu.matmul %3, %44, %cst_15 {dimension_numbers = #tpu.dot_dimension_numbers<[1], [0], [0], [1], [0, 0, 1, 1], [], []>} : vector<64x32xf32>, vector<32x2xf32>, vector<64x2xf32> -> vector<64x2xf32>
    %46 = vector.broadcast %4 : vector<64x1xf32> to vector<64x2xf32>
    %47 = arith.addf %45, %46 : vector<64x2xf32>
    %48 = vector.extract_strided_slice %47 {offsets = [0, 0], sizes = [16, 2], strides = [1, 1]} : vector<64x2xf32> to vector<16x2xf32>
    %49 = arith.negf %48 : vector<16x2xf32>
    %50 = math.exp %49 : vector<16x2xf32>
    %cst_16 = arith.constant 1.000000e+00 : f32
    %51 = vector.broadcast %cst_16 : f32 to vector<16x2xf32>
    %52 = arith.addf %51, %50 : vector<16x2xf32>
    %53 = arith.divf %51, %52 : vector<16x2xf32>
    %54 = vector.extract_strided_slice %47 {offsets = [16, 0], sizes = [16, 2], strides = [1, 1]} : vector<64x2xf32> to vector<16x2xf32>
    %55 = arith.negf %54 : vector<16x2xf32>
    %56 = math.exp %55 : vector<16x2xf32>
    %cst_17 = arith.constant 1.000000e+00 : f32
    %57 = vector.broadcast %cst_17 : f32 to vector<16x2xf32>
    %58 = arith.addf %57, %56 : vector<16x2xf32>
    %59 = arith.divf %57, %58 : vector<16x2xf32>
    %60 = vector.extract_strided_slice %47 {offsets = [32, 0], sizes = [16, 2], strides = [1, 1]} : vector<64x2xf32> to vector<16x2xf32>
    %61 = math.tanh %60 : vector<16x2xf32>
    %62 = vector.extract_strided_slice %47 {offsets = [48, 0], sizes = [16, 2], strides = [1, 1]} : vector<64x2xf32> to vector<16x2xf32>
    %63 = arith.negf %62 : vector<16x2xf32>
    %64 = math.exp %63 : vector<16x2xf32>
    %cst_18 = arith.constant 1.000000e+00 : f32
    %65 = vector.broadcast %cst_18 : f32 to vector<16x2xf32>
    %66 = arith.addf %65, %64 : vector<16x2xf32>
    %67 = arith.divf %65, %66 : vector<16x2xf32>
    %68 = arith.mulf %59, %14 : vector<16x2xf32>
    %69 = arith.mulf %53, %61 : vector<16x2xf32>
    %70 = arith.addf %68, %69 : vector<16x2xf32>
    %71 = math.tanh %70 : vector<16x2xf32>
    %72 = arith.mulf %67, %71 : vector<16x2xf32>
    %73 = vector.extract_strided_slice %13 {offsets = [1, 0, 0], sizes = [1, 64, 2], strides = [1, 1, 1]} : vector<8x64x2xf32> to vector<1x64x2xf32>
    %74 = vector.shape_cast %73 : vector<1x64x2xf32> to vector<64x2xf32>
    %cst_19 = arith.constant dense<0.000000e+00> : vector<64x2xf32>
    %75 = tpu.matmul %2, %43, %cst_19 {dimension_numbers = #tpu.dot_dimension_numbers<[1], [0], [0], [1], [0, 0, 1, 1], [], []>} : vector<64x16xf32>, vector<16x2xf32>, vector<64x2xf32> -> vector<64x2xf32>
    %76 = arith.addf %74, %75 : vector<64x2xf32>
    %77 = vector.extract_strided_slice %76 {offsets = [0, 0], sizes = [16, 2], strides = [1, 1]} : vector<64x2xf32> to vector<16x2xf32>
    %78 = arith.negf %77 : vector<16x2xf32>
    %79 = math.exp %78 : vector<16x2xf32>
    %cst_20 = arith.constant 1.000000e+00 : f32
    %80 = vector.broadcast %cst_20 : f32 to vector<16x2xf32>
    %81 = arith.addf %80, %79 : vector<16x2xf32>
    %82 = arith.divf %80, %81 : vector<16x2xf32>
    %83 = vector.extract_strided_slice %76 {offsets = [16, 0], sizes = [16, 2], strides = [1, 1]} : vector<64x2xf32> to vector<16x2xf32>
    %84 = arith.negf %83 : vector<16x2xf32>
    %85 = math.exp %84 : vector<16x2xf32>
    %cst_21 = arith.constant 1.000000e+00 : f32
    %86 = vector.broadcast %cst_21 : f32 to vector<16x2xf32>
    %87 = arith.addf %86, %85 : vector<16x2xf32>
    %88 = arith.divf %86, %87 : vector<16x2xf32>
    %89 = vector.extract_strided_slice %76 {offsets = [32, 0], sizes = [16, 2], strides = [1, 1]} : vector<64x2xf32> to vector<16x2xf32>
    %90 = math.tanh %89 : vector<16x2xf32>
    %91 = vector.extract_strided_slice %76 {offsets = [48, 0], sizes = [16, 2], strides = [1, 1]} : vector<64x2xf32> to vector<16x2xf32>
    %92 = arith.negf %91 : vector<16x2xf32>
    %93 = math.exp %92 : vector<16x2xf32>
    %cst_22 = arith.constant 1.000000e+00 : f32
    %94 = vector.broadcast %cst_22 : f32 to vector<16x2xf32>
    %95 = arith.addf %94, %93 : vector<16x2xf32>
    %96 = arith.divf %94, %95 : vector<16x2xf32>
    %97 = arith.mulf %88, %41 : vector<16x2xf32>
    %98 = arith.mulf %82, %90 : vector<16x2xf32>
    %99 = arith.addf %97, %98 : vector<16x2xf32>
    %100 = math.tanh %99 : vector<16x2xf32>
    %101 = arith.mulf %96, %100 : vector<16x2xf32>
    %102 = tpu.concatenate %101, %72 in 0 : vector<16x2xf32>, vector<16x2xf32> -> vector<32x2xf32>
    %cst_23 = arith.constant dense<0.000000e+00> : vector<64x2xf32>
    %103 = tpu.matmul %3, %102, %cst_23 {dimension_numbers = #tpu.dot_dimension_numbers<[1], [0], [0], [1], [0, 0, 1, 1], [], []>} : vector<64x32xf32>, vector<32x2xf32>, vector<64x2xf32> -> vector<64x2xf32>
    %104 = vector.broadcast %4 : vector<64x1xf32> to vector<64x2xf32>
    %105 = arith.addf %103, %104 : vector<64x2xf32>
    %106 = vector.extract_strided_slice %105 {offsets = [0, 0], sizes = [16, 2], strides = [1, 1]} : vector<64x2xf32> to vector<16x2xf32>
    %107 = arith.negf %106 : vector<16x2xf32>
    %108 = math.exp %107 : vector<16x2xf32>
    %cst_24 = arith.constant 1.000000e+00 : f32
    %109 = vector.broadcast %cst_24 : f32 to vector<16x2xf32>
    %110 = arith.addf %109, %108 : vector<16x2xf32>
    %111 = arith.divf %109, %110 : vector<16x2xf32>
    %112 = vector.extract_strided_slice %105 {offsets = [16, 0], sizes = [16, 2], strides = [1, 1]} : vector<64x2xf32> to vector<16x2xf32>
    %113 = arith.negf %112 : vector<16x2xf32>
    %114 = math.exp %113 : vector<16x2xf32>
    %cst_25 = arith.constant 1.000000e+00 : f32
    %115 = vector.broadcast %cst_25 : f32 to vector<16x2xf32>
    %116 = arith.addf %115, %114 : vector<16x2xf32>
    %117 = arith.divf %115, %116 : vector<16x2xf32>
    %118 = vector.extract_strided_slice %105 {offsets = [32, 0], sizes = [16, 2], strides = [1, 1]} : vector<64x2xf32> to vector<16x2xf32>
    %119 = math.tanh %118 : vector<16x2xf32>
    %120 = vector.extract_strided_slice %105 {offsets = [48, 0], sizes = [16, 2], strides = [1, 1]} : vector<64x2xf32> to vector<16x2xf32>
    %121 = arith.negf %120 : vector<16x2xf32>
    %122 = math.exp %121 : vector<16x2xf32>
    %cst_26 = arith.constant 1.000000e+00 : f32
    %123 = vector.broadcast %cst_26 : f32 to vector<16x2xf32>
    %124 = arith.addf %123, %122 : vector<16x2xf32>
    %125 = arith.divf %123, %124 : vector<16x2xf32>
    %126 = arith.mulf %117, %70 : vector<16x2xf32>
    %127 = arith.mulf %111, %119 : vector<16x2xf32>
    %128 = arith.addf %126, %127 : vector<16x2xf32>
    %129 = math.tanh %128 : vector<16x2xf32>
    %130 = arith.mulf %125, %129 : vector<16x2xf32>
    %131 = vector.extract_strided_slice %13 {offsets = [2, 0, 0], sizes = [1, 64, 2], strides = [1, 1, 1]} : vector<8x64x2xf32> to vector<1x64x2xf32>
    %132 = vector.shape_cast %131 : vector<1x64x2xf32> to vector<64x2xf32>
    %cst_27 = arith.constant dense<0.000000e+00> : vector<64x2xf32>
    %133 = tpu.matmul %2, %101, %cst_27 {dimension_numbers = #tpu.dot_dimension_numbers<[1], [0], [0], [1], [0, 0, 1, 1], [], []>} : vector<64x16xf32>, vector<16x2xf32>, vector<64x2xf32> -> vector<64x2xf32>
    %134 = arith.addf %132, %133 : vector<64x2xf32>
    %135 = vector.extract_strided_slice %134 {offsets = [0, 0], sizes = [16, 2], strides = [1, 1]} : vector<64x2xf32> to vector<16x2xf32>
    %136 = arith.negf %135 : vector<16x2xf32>
    %137 = math.exp %136 : vector<16x2xf32>
    %cst_28 = arith.constant 1.000000e+00 : f32
    %138 = vector.broadcast %cst_28 : f32 to vector<16x2xf32>
    %139 = arith.addf %138, %137 : vector<16x2xf32>
    %140 = arith.divf %138, %139 : vector<16x2xf32>
    %141 = vector.extract_strided_slice %134 {offsets = [16, 0], sizes = [16, 2], strides = [1, 1]} : vector<64x2xf32> to vector<16x2xf32>
    %142 = arith.negf %141 : vector<16x2xf32>
    %143 = math.exp %142 : vector<16x2xf32>
    %cst_29 = arith.constant 1.000000e+00 : f32
    %144 = vector.broadcast %cst_29 : f32 to vector<16x2xf32>
    %145 = arith.addf %144, %143 : vector<16x2xf32>
    %146 = arith.divf %144, %145 : vector<16x2xf32>
    %147 = vector.extract_strided_slice %134 {offsets = [32, 0], sizes = [16, 2], strides = [1, 1]} : vector<64x2xf32> to vector<16x2xf32>
    %148 = math.tanh %147 : vector<16x2xf32>
    %149 = vector.extract_strided_slice %134 {offsets = [48, 0], sizes = [16, 2], strides = [1, 1]} : vector<64x2xf32> to vector<16x2xf32>
    %150 = arith.negf %149 : vector<16x2xf32>
    %151 = math.exp %150 : vector<16x2xf32>
    %cst_30 = arith.constant 1.000000e+00 : f32
    %152 = vector.broadcast %cst_30 : f32 to vector<16x2xf32>
    %153 = arith.addf %152, %151 : vector<16x2xf32>
    %154 = arith.divf %152, %153 : vector<16x2xf32>
    %155 = arith.mulf %146, %99 : vector<16x2xf32>
    %156 = arith.mulf %140, %148 : vector<16x2xf32>
    %157 = arith.addf %155, %156 : vector<16x2xf32>
    %158 = math.tanh %157 : vector<16x2xf32>
    %159 = arith.mulf %154, %158 : vector<16x2xf32>
    %160 = tpu.concatenate %159, %130 in 0 : vector<16x2xf32>, vector<16x2xf32> -> vector<32x2xf32>
    %cst_31 = arith.constant dense<0.000000e+00> : vector<64x2xf32>
    %161 = tpu.matmul %3, %160, %cst_31 {dimension_numbers = #tpu.dot_dimension_numbers<[1], [0], [0], [1], [0, 0, 1, 1], [], []>} : vector<64x32xf32>, vector<32x2xf32>, vector<64x2xf32> -> vector<64x2xf32>
    %162 = vector.broadcast %4 : vector<64x1xf32> to vector<64x2xf32>
    %163 = arith.addf %161, %162 : vector<64x2xf32>
    %164 = vector.extract_strided_slice %163 {offsets = [0, 0], sizes = [16, 2], strides = [1, 1]} : vector<64x2xf32> to vector<16x2xf32>
    %165 = arith.negf %164 : vector<16x2xf32>
    %166 = math.exp %165 : vector<16x2xf32>
    %cst_32 = arith.constant 1.000000e+00 : f32
    %167 = vector.broadcast %cst_32 : f32 to vector<16x2xf32>
    %168 = arith.addf %167, %166 : vector<16x2xf32>
    %169 = arith.divf %167, %168 : vector<16x2xf32>
    %170 = vector.extract_strided_slice %163 {offsets = [16, 0], sizes = [16, 2], strides = [1, 1]} : vector<64x2xf32> to vector<16x2xf32>
    %171 = arith.negf %170 : vector<16x2xf32>
    %172 = math.exp %171 : vector<16x2xf32>
    %cst_33 = arith.constant 1.000000e+00 : f32
    %173 = vector.broadcast %cst_33 : f32 to vector<16x2xf32>
    %174 = arith.addf %173, %172 : vector<16x2xf32>
    %175 = arith.divf %173, %174 : vector<16x2xf32>
    %176 = vector.extract_strided_slice %163 {offsets = [32, 0], sizes = [16, 2], strides = [1, 1]} : vector<64x2xf32> to vector<16x2xf32>
    %177 = math.tanh %176 : vector<16x2xf32>
    %178 = vector.extract_strided_slice %163 {offsets = [48, 0], sizes = [16, 2], strides = [1, 1]} : vector<64x2xf32> to vector<16x2xf32>
    %179 = arith.negf %178 : vector<16x2xf32>
    %180 = math.exp %179 : vector<16x2xf32>
    %cst_34 = arith.constant 1.000000e+00 : f32
    %181 = vector.broadcast %cst_34 : f32 to vector<16x2xf32>
    %182 = arith.addf %181, %180 : vector<16x2xf32>
    %183 = arith.divf %181, %182 : vector<16x2xf32>
    %184 = arith.mulf %175, %128 : vector<16x2xf32>
    %185 = arith.mulf %169, %177 : vector<16x2xf32>
    %186 = arith.addf %184, %185 : vector<16x2xf32>
    %187 = math.tanh %186 : vector<16x2xf32>
    %188 = arith.mulf %183, %187 : vector<16x2xf32>
    %189 = vector.extract_strided_slice %13 {offsets = [3, 0, 0], sizes = [1, 64, 2], strides = [1, 1, 1]} : vector<8x64x2xf32> to vector<1x64x2xf32>
    %190 = vector.shape_cast %189 : vector<1x64x2xf32> to vector<64x2xf32>
    %cst_35 = arith.constant dense<0.000000e+00> : vector<64x2xf32>
    %191 = tpu.matmul %2, %159, %cst_35 {dimension_numbers = #tpu.dot_dimension_numbers<[1], [0], [0], [1], [0, 0, 1, 1], [], []>} : vector<64x16xf32>, vector<16x2xf32>, vector<64x2xf32> -> vector<64x2xf32>
    %192 = arith.addf %190, %191 : vector<64x2xf32>
    %193 = vector.extract_strided_slice %192 {offsets = [0, 0], sizes = [16, 2], strides = [1, 1]} : vector<64x2xf32> to vector<16x2xf32>
    %194 = arith.negf %193 : vector<16x2xf32>
    %195 = math.exp %194 : vector<16x2xf32>
    %cst_36 = arith.constant 1.000000e+00 : f32
    %196 = vector.broadcast %cst_36 : f32 to vector<16x2xf32>
    %197 = arith.addf %196, %195 : vector<16x2xf32>
    %198 = arith.divf %196, %197 : vector<16x2xf32>
    %199 = vector.extract_strided_slice %192 {offsets = [16, 0], sizes = [16, 2], strides = [1, 1]} : vector<64x2xf32> to vector<16x2xf32>
    %200 = arith.negf %199 : vector<16x2xf32>
    %201 = math.exp %200 : vector<16x2xf32>
    %cst_37 = arith.constant 1.000000e+00 : f32
    %202 = vector.broadcast %cst_37 : f32 to vector<16x2xf32>
    %203 = arith.addf %202, %201 : vector<16x2xf32>
    %204 = arith.divf %202, %203 : vector<16x2xf32>
    %205 = vector.extract_strided_slice %192 {offsets = [32, 0], sizes = [16, 2], strides = [1, 1]} : vector<64x2xf32> to vector<16x2xf32>
    %206 = math.tanh %205 : vector<16x2xf32>
    %207 = vector.extract_strided_slice %192 {offsets = [48, 0], sizes = [16, 2], strides = [1, 1]} : vector<64x2xf32> to vector<16x2xf32>
    %208 = arith.negf %207 : vector<16x2xf32>
    %209 = math.exp %208 : vector<16x2xf32>
    %cst_38 = arith.constant 1.000000e+00 : f32
    %210 = vector.broadcast %cst_38 : f32 to vector<16x2xf32>
    %211 = arith.addf %210, %209 : vector<16x2xf32>
    %212 = arith.divf %210, %211 : vector<16x2xf32>
    %213 = arith.mulf %204, %157 : vector<16x2xf32>
    %214 = arith.mulf %198, %206 : vector<16x2xf32>
    %215 = arith.addf %213, %214 : vector<16x2xf32>
    %216 = math.tanh %215 : vector<16x2xf32>
    %217 = arith.mulf %212, %216 : vector<16x2xf32>
    %218 = tpu.concatenate %217, %188 in 0 : vector<16x2xf32>, vector<16x2xf32> -> vector<32x2xf32>
    %cst_39 = arith.constant dense<0.000000e+00> : vector<64x2xf32>
    %219 = tpu.matmul %3, %218, %cst_39 {dimension_numbers = #tpu.dot_dimension_numbers<[1], [0], [0], [1], [0, 0, 1, 1], [], []>} : vector<64x32xf32>, vector<32x2xf32>, vector<64x2xf32> -> vector<64x2xf32>
    %220 = vector.broadcast %4 : vector<64x1xf32> to vector<64x2xf32>
    %221 = arith.addf %219, %220 : vector<64x2xf32>
    %222 = vector.extract_strided_slice %221 {offsets = [0, 0], sizes = [16, 2], strides = [1, 1]} : vector<64x2xf32> to vector<16x2xf32>
    %223 = arith.negf %222 : vector<16x2xf32>
    %224 = math.exp %223 : vector<16x2xf32>
    %cst_40 = arith.constant 1.000000e+00 : f32
    %225 = vector.broadcast %cst_40 : f32 to vector<16x2xf32>
    %226 = arith.addf %225, %224 : vector<16x2xf32>
    %227 = arith.divf %225, %226 : vector<16x2xf32>
    %228 = vector.extract_strided_slice %221 {offsets = [16, 0], sizes = [16, 2], strides = [1, 1]} : vector<64x2xf32> to vector<16x2xf32>
    %229 = arith.negf %228 : vector<16x2xf32>
    %230 = math.exp %229 : vector<16x2xf32>
    %cst_41 = arith.constant 1.000000e+00 : f32
    %231 = vector.broadcast %cst_41 : f32 to vector<16x2xf32>
    %232 = arith.addf %231, %230 : vector<16x2xf32>
    %233 = arith.divf %231, %232 : vector<16x2xf32>
    %234 = vector.extract_strided_slice %221 {offsets = [32, 0], sizes = [16, 2], strides = [1, 1]} : vector<64x2xf32> to vector<16x2xf32>
    %235 = math.tanh %234 : vector<16x2xf32>
    %236 = vector.extract_strided_slice %221 {offsets = [48, 0], sizes = [16, 2], strides = [1, 1]} : vector<64x2xf32> to vector<16x2xf32>
    %237 = arith.negf %236 : vector<16x2xf32>
    %238 = math.exp %237 : vector<16x2xf32>
    %cst_42 = arith.constant 1.000000e+00 : f32
    %239 = vector.broadcast %cst_42 : f32 to vector<16x2xf32>
    %240 = arith.addf %239, %238 : vector<16x2xf32>
    %241 = arith.divf %239, %240 : vector<16x2xf32>
    %242 = arith.mulf %233, %186 : vector<16x2xf32>
    %243 = arith.mulf %227, %235 : vector<16x2xf32>
    %244 = arith.addf %242, %243 : vector<16x2xf32>
    %245 = math.tanh %244 : vector<16x2xf32>
    %246 = arith.mulf %241, %245 : vector<16x2xf32>
    %247 = vector.extract_strided_slice %13 {offsets = [4, 0, 0], sizes = [1, 64, 2], strides = [1, 1, 1]} : vector<8x64x2xf32> to vector<1x64x2xf32>
    %248 = vector.shape_cast %247 : vector<1x64x2xf32> to vector<64x2xf32>
    %cst_43 = arith.constant dense<0.000000e+00> : vector<64x2xf32>
    %249 = tpu.matmul %2, %217, %cst_43 {dimension_numbers = #tpu.dot_dimension_numbers<[1], [0], [0], [1], [0, 0, 1, 1], [], []>} : vector<64x16xf32>, vector<16x2xf32>, vector<64x2xf32> -> vector<64x2xf32>
    %250 = arith.addf %248, %249 : vector<64x2xf32>
    %251 = vector.extract_strided_slice %250 {offsets = [0, 0], sizes = [16, 2], strides = [1, 1]} : vector<64x2xf32> to vector<16x2xf32>
    %252 = arith.negf %251 : vector<16x2xf32>
    %253 = math.exp %252 : vector<16x2xf32>
    %cst_44 = arith.constant 1.000000e+00 : f32
    %254 = vector.broadcast %cst_44 : f32 to vector<16x2xf32>
    %255 = arith.addf %254, %253 : vector<16x2xf32>
    %256 = arith.divf %254, %255 : vector<16x2xf32>
    %257 = vector.extract_strided_slice %250 {offsets = [16, 0], sizes = [16, 2], strides = [1, 1]} : vector<64x2xf32> to vector<16x2xf32>
    %258 = arith.negf %257 : vector<16x2xf32>
    %259 = math.exp %258 : vector<16x2xf32>
    %cst_45 = arith.constant 1.000000e+00 : f32
    %260 = vector.broadcast %cst_45 : f32 to vector<16x2xf32>
    %261 = arith.addf %260, %259 : vector<16x2xf32>
    %262 = arith.divf %260, %261 : vector<16x2xf32>
    %263 = vector.extract_strided_slice %250 {offsets = [32, 0], sizes = [16, 2], strides = [1, 1]} : vector<64x2xf32> to vector<16x2xf32>
    %264 = math.tanh %263 : vector<16x2xf32>
    %265 = vector.extract_strided_slice %250 {offsets = [48, 0], sizes = [16, 2], strides = [1, 1]} : vector<64x2xf32> to vector<16x2xf32>
    %266 = arith.negf %265 : vector<16x2xf32>
    %267 = math.exp %266 : vector<16x2xf32>
    %cst_46 = arith.constant 1.000000e+00 : f32
    %268 = vector.broadcast %cst_46 : f32 to vector<16x2xf32>
    %269 = arith.addf %268, %267 : vector<16x2xf32>
    %270 = arith.divf %268, %269 : vector<16x2xf32>
    %271 = arith.mulf %262, %215 : vector<16x2xf32>
    %272 = arith.mulf %256, %264 : vector<16x2xf32>
    %273 = arith.addf %271, %272 : vector<16x2xf32>
    %274 = math.tanh %273 : vector<16x2xf32>
    %275 = arith.mulf %270, %274 : vector<16x2xf32>
    %276 = tpu.concatenate %275, %246 in 0 : vector<16x2xf32>, vector<16x2xf32> -> vector<32x2xf32>
    %cst_47 = arith.constant dense<0.000000e+00> : vector<64x2xf32>
    %277 = tpu.matmul %3, %276, %cst_47 {dimension_numbers = #tpu.dot_dimension_numbers<[1], [0], [0], [1], [0, 0, 1, 1], [], []>} : vector<64x32xf32>, vector<32x2xf32>, vector<64x2xf32> -> vector<64x2xf32>
    %278 = vector.broadcast %4 : vector<64x1xf32> to vector<64x2xf32>
    %279 = arith.addf %277, %278 : vector<64x2xf32>
    %280 = vector.extract_strided_slice %279 {offsets = [0, 0], sizes = [16, 2], strides = [1, 1]} : vector<64x2xf32> to vector<16x2xf32>
    %281 = arith.negf %280 : vector<16x2xf32>
    %282 = math.exp %281 : vector<16x2xf32>
    %cst_48 = arith.constant 1.000000e+00 : f32
    %283 = vector.broadcast %cst_48 : f32 to vector<16x2xf32>
    %284 = arith.addf %283, %282 : vector<16x2xf32>
    %285 = arith.divf %283, %284 : vector<16x2xf32>
    %286 = vector.extract_strided_slice %279 {offsets = [16, 0], sizes = [16, 2], strides = [1, 1]} : vector<64x2xf32> to vector<16x2xf32>
    %287 = arith.negf %286 : vector<16x2xf32>
    %288 = math.exp %287 : vector<16x2xf32>
    %cst_49 = arith.constant 1.000000e+00 : f32
    %289 = vector.broadcast %cst_49 : f32 to vector<16x2xf32>
    %290 = arith.addf %289, %288 : vector<16x2xf32>
    %291 = arith.divf %289, %290 : vector<16x2xf32>
    %292 = vector.extract_strided_slice %279 {offsets = [32, 0], sizes = [16, 2], strides = [1, 1]} : vector<64x2xf32> to vector<16x2xf32>
    %293 = math.tanh %292 : vector<16x2xf32>
    %294 = vector.extract_strided_slice %279 {offsets = [48, 0], sizes = [16, 2], strides = [1, 1]} : vector<64x2xf32> to vector<16x2xf32>
    %295 = arith.negf %294 : vector<16x2xf32>
    %296 = math.exp %295 : vector<16x2xf32>
    %cst_50 = arith.constant 1.000000e+00 : f32
    %297 = vector.broadcast %cst_50 : f32 to vector<16x2xf32>
    %298 = arith.addf %297, %296 : vector<16x2xf32>
    %299 = arith.divf %297, %298 : vector<16x2xf32>
    %300 = arith.mulf %291, %244 : vector<16x2xf32>
    %301 = arith.mulf %285, %293 : vector<16x2xf32>
    %302 = arith.addf %300, %301 : vector<16x2xf32>
    %303 = math.tanh %302 : vector<16x2xf32>
    %304 = arith.mulf %299, %303 : vector<16x2xf32>
    %305 = vector.extract_strided_slice %13 {offsets = [5, 0, 0], sizes = [1, 64, 2], strides = [1, 1, 1]} : vector<8x64x2xf32> to vector<1x64x2xf32>
    %306 = vector.shape_cast %305 : vector<1x64x2xf32> to vector<64x2xf32>
    %cst_51 = arith.constant dense<0.000000e+00> : vector<64x2xf32>
    %307 = tpu.matmul %2, %275, %cst_51 {dimension_numbers = #tpu.dot_dimension_numbers<[1], [0], [0], [1], [0, 0, 1, 1], [], []>} : vector<64x16xf32>, vector<16x2xf32>, vector<64x2xf32> -> vector<64x2xf32>
    %308 = arith.addf %306, %307 : vector<64x2xf32>
    %309 = vector.extract_strided_slice %308 {offsets = [0, 0], sizes = [16, 2], strides = [1, 1]} : vector<64x2xf32> to vector<16x2xf32>
    %310 = arith.negf %309 : vector<16x2xf32>
    %311 = math.exp %310 : vector<16x2xf32>
    %cst_52 = arith.constant 1.000000e+00 : f32
    %312 = vector.broadcast %cst_52 : f32 to vector<16x2xf32>
    %313 = arith.addf %312, %311 : vector<16x2xf32>
    %314 = arith.divf %312, %313 : vector<16x2xf32>
    %315 = vector.extract_strided_slice %308 {offsets = [16, 0], sizes = [16, 2], strides = [1, 1]} : vector<64x2xf32> to vector<16x2xf32>
    %316 = arith.negf %315 : vector<16x2xf32>
    %317 = math.exp %316 : vector<16x2xf32>
    %cst_53 = arith.constant 1.000000e+00 : f32
    %318 = vector.broadcast %cst_53 : f32 to vector<16x2xf32>
    %319 = arith.addf %318, %317 : vector<16x2xf32>
    %320 = arith.divf %318, %319 : vector<16x2xf32>
    %321 = vector.extract_strided_slice %308 {offsets = [32, 0], sizes = [16, 2], strides = [1, 1]} : vector<64x2xf32> to vector<16x2xf32>
    %322 = math.tanh %321 : vector<16x2xf32>
    %323 = vector.extract_strided_slice %308 {offsets = [48, 0], sizes = [16, 2], strides = [1, 1]} : vector<64x2xf32> to vector<16x2xf32>
    %324 = arith.negf %323 : vector<16x2xf32>
    %325 = math.exp %324 : vector<16x2xf32>
    %cst_54 = arith.constant 1.000000e+00 : f32
    %326 = vector.broadcast %cst_54 : f32 to vector<16x2xf32>
    %327 = arith.addf %326, %325 : vector<16x2xf32>
    %328 = arith.divf %326, %327 : vector<16x2xf32>
    %329 = arith.mulf %320, %273 : vector<16x2xf32>
    %330 = arith.mulf %314, %322 : vector<16x2xf32>
    %331 = arith.addf %329, %330 : vector<16x2xf32>
    %332 = math.tanh %331 : vector<16x2xf32>
    %333 = arith.mulf %328, %332 : vector<16x2xf32>
    %334 = tpu.concatenate %333, %304 in 0 : vector<16x2xf32>, vector<16x2xf32> -> vector<32x2xf32>
    %cst_55 = arith.constant dense<0.000000e+00> : vector<64x2xf32>
    %335 = tpu.matmul %3, %334, %cst_55 {dimension_numbers = #tpu.dot_dimension_numbers<[1], [0], [0], [1], [0, 0, 1, 1], [], []>} : vector<64x32xf32>, vector<32x2xf32>, vector<64x2xf32> -> vector<64x2xf32>
    %336 = vector.broadcast %4 : vector<64x1xf32> to vector<64x2xf32>
    %337 = arith.addf %335, %336 : vector<64x2xf32>
    %338 = vector.extract_strided_slice %337 {offsets = [0, 0], sizes = [16, 2], strides = [1, 1]} : vector<64x2xf32> to vector<16x2xf32>
    %339 = arith.negf %338 : vector<16x2xf32>
    %340 = math.exp %339 : vector<16x2xf32>
    %cst_56 = arith.constant 1.000000e+00 : f32
    %341 = vector.broadcast %cst_56 : f32 to vector<16x2xf32>
    %342 = arith.addf %341, %340 : vector<16x2xf32>
    %343 = arith.divf %341, %342 : vector<16x2xf32>
    %344 = vector.extract_strided_slice %337 {offsets = [16, 0], sizes = [16, 2], strides = [1, 1]} : vector<64x2xf32> to vector<16x2xf32>
    %345 = arith.negf %344 : vector<16x2xf32>
    %346 = math.exp %345 : vector<16x2xf32>
    %cst_57 = arith.constant 1.000000e+00 : f32
    %347 = vector.broadcast %cst_57 : f32 to vector<16x2xf32>
    %348 = arith.addf %347, %346 : vector<16x2xf32>
    %349 = arith.divf %347, %348 : vector<16x2xf32>
    %350 = vector.extract_strided_slice %337 {offsets = [32, 0], sizes = [16, 2], strides = [1, 1]} : vector<64x2xf32> to vector<16x2xf32>
    %351 = math.tanh %350 : vector<16x2xf32>
    %352 = vector.extract_strided_slice %337 {offsets = [48, 0], sizes = [16, 2], strides = [1, 1]} : vector<64x2xf32> to vector<16x2xf32>
    %353 = arith.negf %352 : vector<16x2xf32>
    %354 = math.exp %353 : vector<16x2xf32>
    %cst_58 = arith.constant 1.000000e+00 : f32
    %355 = vector.broadcast %cst_58 : f32 to vector<16x2xf32>
    %356 = arith.addf %355, %354 : vector<16x2xf32>
    %357 = arith.divf %355, %356 : vector<16x2xf32>
    %358 = arith.mulf %349, %302 : vector<16x2xf32>
    %359 = arith.mulf %343, %351 : vector<16x2xf32>
    %360 = arith.addf %358, %359 : vector<16x2xf32>
    %361 = math.tanh %360 : vector<16x2xf32>
    %362 = arith.mulf %357, %361 : vector<16x2xf32>
    %363 = vector.extract_strided_slice %13 {offsets = [6, 0, 0], sizes = [1, 64, 2], strides = [1, 1, 1]} : vector<8x64x2xf32> to vector<1x64x2xf32>
    %364 = vector.shape_cast %363 : vector<1x64x2xf32> to vector<64x2xf32>
    %cst_59 = arith.constant dense<0.000000e+00> : vector<64x2xf32>
    %365 = tpu.matmul %2, %333, %cst_59 {dimension_numbers = #tpu.dot_dimension_numbers<[1], [0], [0], [1], [0, 0, 1, 1], [], []>} : vector<64x16xf32>, vector<16x2xf32>, vector<64x2xf32> -> vector<64x2xf32>
    %366 = arith.addf %364, %365 : vector<64x2xf32>
    %367 = vector.extract_strided_slice %366 {offsets = [0, 0], sizes = [16, 2], strides = [1, 1]} : vector<64x2xf32> to vector<16x2xf32>
    %368 = arith.negf %367 : vector<16x2xf32>
    %369 = math.exp %368 : vector<16x2xf32>
    %cst_60 = arith.constant 1.000000e+00 : f32
    %370 = vector.broadcast %cst_60 : f32 to vector<16x2xf32>
    %371 = arith.addf %370, %369 : vector<16x2xf32>
    %372 = arith.divf %370, %371 : vector<16x2xf32>
    %373 = vector.extract_strided_slice %366 {offsets = [16, 0], sizes = [16, 2], strides = [1, 1]} : vector<64x2xf32> to vector<16x2xf32>
    %374 = arith.negf %373 : vector<16x2xf32>
    %375 = math.exp %374 : vector<16x2xf32>
    %cst_61 = arith.constant 1.000000e+00 : f32
    %376 = vector.broadcast %cst_61 : f32 to vector<16x2xf32>
    %377 = arith.addf %376, %375 : vector<16x2xf32>
    %378 = arith.divf %376, %377 : vector<16x2xf32>
    %379 = vector.extract_strided_slice %366 {offsets = [32, 0], sizes = [16, 2], strides = [1, 1]} : vector<64x2xf32> to vector<16x2xf32>
    %380 = math.tanh %379 : vector<16x2xf32>
    %381 = vector.extract_strided_slice %366 {offsets = [48, 0], sizes = [16, 2], strides = [1, 1]} : vector<64x2xf32> to vector<16x2xf32>
    %382 = arith.negf %381 : vector<16x2xf32>
    %383 = math.exp %382 : vector<16x2xf32>
    %cst_62 = arith.constant 1.000000e+00 : f32
    %384 = vector.broadcast %cst_62 : f32 to vector<16x2xf32>
    %385 = arith.addf %384, %383 : vector<16x2xf32>
    %386 = arith.divf %384, %385 : vector<16x2xf32>
    %387 = arith.mulf %378, %331 : vector<16x2xf32>
    %388 = arith.mulf %372, %380 : vector<16x2xf32>
    %389 = arith.addf %387, %388 : vector<16x2xf32>
    %390 = math.tanh %389 : vector<16x2xf32>
    %391 = arith.mulf %386, %390 : vector<16x2xf32>
    %392 = tpu.concatenate %391, %362 in 0 : vector<16x2xf32>, vector<16x2xf32> -> vector<32x2xf32>
    %cst_63 = arith.constant dense<0.000000e+00> : vector<64x2xf32>
    %393 = tpu.matmul %3, %392, %cst_63 {dimension_numbers = #tpu.dot_dimension_numbers<[1], [0], [0], [1], [0, 0, 1, 1], [], []>} : vector<64x32xf32>, vector<32x2xf32>, vector<64x2xf32> -> vector<64x2xf32>
    %394 = vector.broadcast %4 : vector<64x1xf32> to vector<64x2xf32>
    %395 = arith.addf %393, %394 : vector<64x2xf32>
    %396 = vector.extract_strided_slice %395 {offsets = [0, 0], sizes = [16, 2], strides = [1, 1]} : vector<64x2xf32> to vector<16x2xf32>
    %397 = arith.negf %396 : vector<16x2xf32>
    %398 = math.exp %397 : vector<16x2xf32>
    %cst_64 = arith.constant 1.000000e+00 : f32
    %399 = vector.broadcast %cst_64 : f32 to vector<16x2xf32>
    %400 = arith.addf %399, %398 : vector<16x2xf32>
    %401 = arith.divf %399, %400 : vector<16x2xf32>
    %402 = vector.extract_strided_slice %395 {offsets = [16, 0], sizes = [16, 2], strides = [1, 1]} : vector<64x2xf32> to vector<16x2xf32>
    %403 = arith.negf %402 : vector<16x2xf32>
    %404 = math.exp %403 : vector<16x2xf32>
    %cst_65 = arith.constant 1.000000e+00 : f32
    %405 = vector.broadcast %cst_65 : f32 to vector<16x2xf32>
    %406 = arith.addf %405, %404 : vector<16x2xf32>
    %407 = arith.divf %405, %406 : vector<16x2xf32>
    %408 = vector.extract_strided_slice %395 {offsets = [32, 0], sizes = [16, 2], strides = [1, 1]} : vector<64x2xf32> to vector<16x2xf32>
    %409 = math.tanh %408 : vector<16x2xf32>
    %410 = vector.extract_strided_slice %395 {offsets = [48, 0], sizes = [16, 2], strides = [1, 1]} : vector<64x2xf32> to vector<16x2xf32>
    %411 = arith.negf %410 : vector<16x2xf32>
    %412 = math.exp %411 : vector<16x2xf32>
    %cst_66 = arith.constant 1.000000e+00 : f32
    %413 = vector.broadcast %cst_66 : f32 to vector<16x2xf32>
    %414 = arith.addf %413, %412 : vector<16x2xf32>
    %415 = arith.divf %413, %414 : vector<16x2xf32>
    %416 = arith.mulf %407, %360 : vector<16x2xf32>
    %417 = arith.mulf %401, %409 : vector<16x2xf32>
    %418 = arith.addf %416, %417 : vector<16x2xf32>
    %419 = math.tanh %418 : vector<16x2xf32>
    %420 = arith.mulf %415, %419 : vector<16x2xf32>
    %421 = vector.extract_strided_slice %13 {offsets = [7, 0, 0], sizes = [1, 64, 2], strides = [1, 1, 1]} : vector<8x64x2xf32> to vector<1x64x2xf32>
    %422 = vector.shape_cast %421 : vector<1x64x2xf32> to vector<64x2xf32>
    %cst_67 = arith.constant dense<0.000000e+00> : vector<64x2xf32>
    %423 = tpu.matmul %2, %391, %cst_67 {dimension_numbers = #tpu.dot_dimension_numbers<[1], [0], [0], [1], [0, 0, 1, 1], [], []>} : vector<64x16xf32>, vector<16x2xf32>, vector<64x2xf32> -> vector<64x2xf32>
    %424 = arith.addf %422, %423 : vector<64x2xf32>
    %425 = vector.extract_strided_slice %424 {offsets = [0, 0], sizes = [16, 2], strides = [1, 1]} : vector<64x2xf32> to vector<16x2xf32>
    %426 = arith.negf %425 : vector<16x2xf32>
    %427 = math.exp %426 : vector<16x2xf32>
    %cst_68 = arith.constant 1.000000e+00 : f32
    %428 = vector.broadcast %cst_68 : f32 to vector<16x2xf32>
    %429 = arith.addf %428, %427 : vector<16x2xf32>
    %430 = arith.divf %428, %429 : vector<16x2xf32>
    %431 = vector.extract_strided_slice %424 {offsets = [16, 0], sizes = [16, 2], strides = [1, 1]} : vector<64x2xf32> to vector<16x2xf32>
    %432 = arith.negf %431 : vector<16x2xf32>
    %433 = math.exp %432 : vector<16x2xf32>
    %cst_69 = arith.constant 1.000000e+00 : f32
    %434 = vector.broadcast %cst_69 : f32 to vector<16x2xf32>
    %435 = arith.addf %434, %433 : vector<16x2xf32>
    %436 = arith.divf %434, %435 : vector<16x2xf32>
    %437 = vector.extract_strided_slice %424 {offsets = [32, 0], sizes = [16, 2], strides = [1, 1]} : vector<64x2xf32> to vector<16x2xf32>
    %438 = math.tanh %437 : vector<16x2xf32>
    %439 = vector.extract_strided_slice %424 {offsets = [48, 0], sizes = [16, 2], strides = [1, 1]} : vector<64x2xf32> to vector<16x2xf32>
    %440 = arith.negf %439 : vector<16x2xf32>
    %441 = math.exp %440 : vector<16x2xf32>
    %cst_70 = arith.constant 1.000000e+00 : f32
    %442 = vector.broadcast %cst_70 : f32 to vector<16x2xf32>
    %443 = arith.addf %442, %441 : vector<16x2xf32>
    %444 = arith.divf %442, %443 : vector<16x2xf32>
    %445 = arith.mulf %436, %389 : vector<16x2xf32>
    %446 = arith.mulf %430, %438 : vector<16x2xf32>
    %447 = arith.addf %445, %446 : vector<16x2xf32>
    %448 = math.tanh %447 : vector<16x2xf32>
    %449 = arith.mulf %444, %448 : vector<16x2xf32>
    %450 = tpu.concatenate %449, %420 in 0 : vector<16x2xf32>, vector<16x2xf32> -> vector<32x2xf32>
    %cst_71 = arith.constant dense<0.000000e+00> : vector<64x2xf32>
    %451 = tpu.matmul %3, %450, %cst_71 {dimension_numbers = #tpu.dot_dimension_numbers<[1], [0], [0], [1], [0, 0, 1, 1], [], []>} : vector<64x32xf32>, vector<32x2xf32>, vector<64x2xf32> -> vector<64x2xf32>
    %452 = vector.broadcast %4 : vector<64x1xf32> to vector<64x2xf32>
    %453 = arith.addf %451, %452 : vector<64x2xf32>
    %454 = vector.extract_strided_slice %453 {offsets = [0, 0], sizes = [16, 2], strides = [1, 1]} : vector<64x2xf32> to vector<16x2xf32>
    %455 = arith.negf %454 : vector<16x2xf32>
    %456 = math.exp %455 : vector<16x2xf32>
    %cst_72 = arith.constant 1.000000e+00 : f32
    %457 = vector.broadcast %cst_72 : f32 to vector<16x2xf32>
    %458 = arith.addf %457, %456 : vector<16x2xf32>
    %459 = arith.divf %457, %458 : vector<16x2xf32>
    %460 = vector.extract_strided_slice %453 {offsets = [16, 0], sizes = [16, 2], strides = [1, 1]} : vector<64x2xf32> to vector<16x2xf32>
    %461 = arith.negf %460 : vector<16x2xf32>
    %462 = math.exp %461 : vector<16x2xf32>
    %cst_73 = arith.constant 1.000000e+00 : f32
    %463 = vector.broadcast %cst_73 : f32 to vector<16x2xf32>
    %464 = arith.addf %463, %462 : vector<16x2xf32>
    %465 = arith.divf %463, %464 : vector<16x2xf32>
    %466 = vector.extract_strided_slice %453 {offsets = [32, 0], sizes = [16, 2], strides = [1, 1]} : vector<64x2xf32> to vector<16x2xf32>
    %467 = math.tanh %466 : vector<16x2xf32>
    %468 = vector.extract_strided_slice %453 {offsets = [48, 0], sizes = [16, 2], strides = [1, 1]} : vector<64x2xf32> to vector<16x2xf32>
    %469 = arith.negf %468 : vector<16x2xf32>
    %470 = math.exp %469 : vector<16x2xf32>
    %cst_74 = arith.constant 1.000000e+00 : f32
    %471 = vector.broadcast %cst_74 : f32 to vector<16x2xf32>
    %472 = arith.addf %471, %470 : vector<16x2xf32>
    %473 = arith.divf %471, %472 : vector<16x2xf32>
    %474 = arith.mulf %465, %418 : vector<16x2xf32>
    %475 = arith.mulf %459, %467 : vector<16x2xf32>
    %476 = arith.addf %474, %475 : vector<16x2xf32>
    %477 = math.tanh %476 : vector<16x2xf32>
    %478 = arith.mulf %473, %477 : vector<16x2xf32>
    %c0_75 = arith.constant 0 : index
    %c0_76 = arith.constant 0 : index
    %479 = vector.load %arg6[%c0_75, %c0_76] : memref<1x16xf32, #tpu.memory_space<vmem>>, vector<1x16xf32>
    %cst_77 = arith.constant dense<0.000000e+00> : vector<1x2xf32>
    %480 = tpu.matmul %479, %478, %cst_77 {dimension_numbers = #tpu.dot_dimension_numbers<[1], [0], [0], [1], [0, 0, 1, 1], [], []>} : vector<1x16xf32>, vector<16x2xf32>, vector<1x2xf32> -> vector<1x2xf32>
    %c0_78 = arith.constant 0 : index
    %c0_79 = arith.constant 0 : index
    %481 = vector.load %arg7[%c0_78, %c0_79] : memref<1x1xf32, #tpu.memory_space<vmem>>, vector<1x1xf32>
    %482 = vector.broadcast %481 : vector<1x1xf32> to vector<1x2xf32>
    %483 = arith.addf %480, %482 : vector<1x2xf32>
    %c0_80 = arith.constant 0 : index
    %c0_81 = arith.constant 0 : index
    %484 = vector.load %arg8[%c0_80, %c0_81] : memref<1x2xf32, #tpu.memory_space<vmem>>, vector<1x2xf32>
    tpu.vector_store %arg8[%c0_80, %c0_81], %483 {strides = array<i32>} : memref<1x2xf32, #tpu.memory_space<vmem>>, vector<1x2xf32>,
    return
  }
}

</mosaic_0001>

<bundles_post_ra>
// kernel: tpu_custom_call.1
= control target key start
LH: loop header
LB: loop body
LE: loop exit
PB: predicated region body
PF: predicated region fallthrough
CT: control target
= control target key end

     0   :  { %s5579_s0 = inlined_call_operand.vmem [shape: f32[8,2], index: 0, kind: input, shape index: {}]   ;;  %s5580_s1 = inlined_call_operand.vmem [shape: f32[64,1], index: 1, kind: input, shape index: {}]   ;;  %s5581_s2 = inlined_call_operand.vmem [shape: f32[64,16], index: 2, kind: input, shape index: {}]   ;;  %s5582_s3 = inlined_call_operand.vmem [shape: f32[64,1], index: 3, kind: input, shape index: {}]   ;;  %s5583_s4 = inlined_call_operand.vmem [shape: f32[64,32], index: 4, kind: input, shape index: {}]   ;;  %s5584_s5 = inlined_call_operand.vmem [shape: f32[64,1], index: 5, kind: input, shape index: {}]   ;;  %s5585_s6 = inlined_call_operand.vmem [shape: f32[1,16], index: 6, kind: input, shape index: {}]   ;;  %s5586_s7 = inlined_call_operand.<no memory space> [shape: f32[1,1], index: 7, kind: input, shape index: {}]   ;;  %s5587_s8 = inlined_call_operand.hbm [shape: f32[1,2], index: 8, kind: output, shape index: {}]  }
   0x1   :  { %v13_v0 = vstv %s5586_s7 }
   0x2   :  { %14 = vst [vmem:[#allocation2] sm:$0x1] %v13_v0 }
   0x3   :  { %v4480_v1 = vld [vmem:[%s5581_s2] sm:$0xff]  ;;  %vm371_vm0 = vcmask 130048   ;;  %v4485_v2 = vld [vmem:[%s5581_s2 + $0x8] sm:$0xff]  ;;  %v5588_v3 = vmov 0.0   ;;  %v4493_v4 = vld [vmem:[%s5581_s2 + $0x10] sm:$0xff]  ;;  %v4424_v5 = vmov 0  }
   0x4   :  { %3474 = vmatprep.subr.mxu0 %v5588_v3  ;;  %3476 = vmatprep.mubr.msk.f32.mxu0 %vm371_vm0, %v4480_v1  ;;  %v33_v6 = vld [vmem:[%s5580_s1] sm:$0xff]  ;;  %v35_v7 = vld [vmem:[%s5580_s1 + $0x10] sm:$0xff]  ;;  %v4509_v8 = vld [vmem:[%s5581_s2 + $0x18] sm:$0xff] }
   0x5   :  { %3475 = vmatpush3.msra.mxu0 %v5588_v3  ;;  %3860 = vset.pattern.permute.xlu0 %v4424_v5  ;;  %v34_v9 = vld [vmem:[%s5580_s1 + $0x8] sm:$0xff]  ;;  %v4517_v10 = vld [vmem:[%s5581_s2 + $0x20] sm:$0xff]  ;;  %v36_v11 = vld [vmem:[%s5580_s1 + $0x18] sm:$0xff] }
   0x6   :  { %3477 = vmatmul.mubr.msk.f32.vlgmr.msra.gmra.mrb[0].mxu0 %vm371_vm0, %v4485_v2  ;;  %157 = vperm.xlu0 %3860, %v33_v6   ;;  %v4529_v12 = vld [vmem:[%s5581_s2 + $0x28] sm:$0xff]  ;;  %v259_v13 = vld [vmem:[%s5582_s3] sm:$0xff]  ;;  %v4537_v14 = vld [vmem:[%s5581_s2 + $0x30] sm:$0xff] }
   0x7   :  { %3479 = vmatprep.mubr.msk.f32.mxu0 %vm371_vm0, %v4493_v4  ;;  %3861 = vset.pattern.permute.xlu1 %v4424_v5  ;;  %v260_v15 = vld [vmem:[%s5582_s3 + $0x8] sm:$0xff] }
   0x8   :  { %167 = vperm.xlu1 %3861, %v35_v7  }
   0xa   :  { %3480 = vmatmul.mubr.msk.f32.gmra.mrb[2].mxu0 %vm371_vm0, %v4509_v8  ;;  %162 = vperm.xlu0 %3860, %v34_v9  }
   0xb   :  { %3482 = vmatprep.mubr.msk.f32.mxu0 %vm371_vm0, %v4517_v10 }
   0xc   :  { %172 = vperm.xlu1 %3861, %v36_v11  }
   0xe   :  { %3483 = vmatmul.mubr.msk.f32.gmra.mrb[4].mxu0 %vm371_vm0, %v4529_v12  ;;  %269 = vperm.xlu0 %3860, %v259_v13  }
   0xf   :  { %15 = vsyncpa [#allocation4], 0  ;;  %3485 = vmatprep.mubr.msk.f32.mxu0 %vm371_vm0, %v4537_v14  ;;  %v4549_v16 = vld [vmem:[%s5581_s2 + $0x38] sm:$0xff]  ;;  %v261_v17 = vld [vmem:[%s5582_s3 + $0x10] sm:$0xff]  ;;  %v4425_v36 = vmov 1966171168   ;;  %v70_v38 = vlaneseq }
  0x10   :  { %274 = vperm.xlu1 %3861, %v260_v15   ;;  %v262_v18 = vld [vmem:[%s5582_s3 + $0x18] sm:$0xff]  ;;  %v37_v19 = vld [vmem:[%s5580_s1 + $0x20] sm:$0xff]  ;;  %v38_v20 = vld [vmem:[%s5580_s1 + $0x28] sm:$0xff]  ;;  %v68_v37 = vunpack.c.l.s4 %v4425_v36  ;;  %vm597_vm1 = vcmask 261120   ;;  %vm4427_vm2 = vmmov 0   ;;  %s4428_s9 = smov [#allocation3]  }
  0x11   :  { %v39_v21 = vld [vmem:[%s5580_s1 + $0x30] sm:$0xff]  ;;  %v40_v22 = vld [vmem:[%s5580_s1 + $0x38] sm:$0xff]  ;;  %v263_v23 = vld [vmem:[%s5582_s3 + $0x20] sm:$0xff]  ;;  %v71_v40 = vshrl.u32 %v70_v38, 7  ;;  %s3065_s10 = sshll.u32 %s4428_s9, 4  ;;  %vm3057_vm3 = vcmask 8192   ;;  %s3066_s10 = int_to_ptr.vmem [resolvable:$true] %s3065_s10 }
  0x12   :  { %3486 = vmatmul.mubr.msk.f32.gmra.mrb[6].mxu0 %vm371_vm0, %v4549_v16  ;;  %279 = vperm.xlu0 %3860, %v261_v17   ;;  %v264_v24 = vld [vmem:[%s5582_s3 + $0x28] sm:$0xff]  ;;  %v265_v25 = vld [vmem:[%s5582_s3 + $0x30] sm:$0xff]  ;;  %v266_v26 = vld [vmem:[%s5582_s3 + $0x38] sm:$0xff]  ;;  %v69_v39 = vunpack.c.0.s8 %v68_v37  ;;  %s4399_s11 = scalar_lea.vmem %s3066_s10, 16  ;;  %s4403_s7 = scalar_lea.vmem %s3066_s10, 32 }
  0x13   :  { %3508 = vmatprep.mubr.msk.f32.mxu0 %vm371_vm0, %v4480_v1  ;;  %v57_v27 = vld [vmem:[%s5584_s5] sm:$0xff]  ;;  %v58_v28 = vld [vmem:[%s5584_s5 + $0x8] sm:$0xff]  ;;  %v59_v29 = vld [vmem:[%s5584_s5 + $0x10] sm:$0xff]  ;;  %v4614_v52 = vsub.s32 0, %v71_v40  ;;  %p4400_p0 = scmp.ne.s32.totalorder %s3066_s10, %s4399_s11  ;;  %p4404_p1 = scmp.lt.s32.totalorder %s3066_s10, %s3066_s10 }
  0x14   :  { %284 = vperm.xlu1 %3861, %v262_v18   ;;  %v60_v30 = vld [vmem:[%s5584_s5 + $0x18] sm:$0xff]  ;;  %v61_v31 = vld [vmem:[%s5584_s5 + $0x20] sm:$0xff]  ;;  %v62_v32 = vld [vmem:[%s5584_s5 + $0x28] sm:$0xff]  ;;  %v72_v41 = vsub.s32 %v69_v39, %v71_v40  ;;  %p4405_p2 = scmp.lt.s32.totalorder %s4403_s7, %s4399_s11 }
  0x15   :  { %v63_v33 = vld [vmem:[%s5584_s5 + $0x30] sm:$0xff]  ;;  %v64_v34 = vld [vmem:[%s5584_s5 + $0x38] sm:$0xff]  ;;  %v2974_v35 = vld [vmem:[#allocation2] sm:$0x1]  ;;  %5590 = vst [vmem:[#allocation6_spill] sm:$0xff] %v4614_v52 }
  0x16   :  { %177 = vperm.xlu0 %3860, %v37_v19   ;;  %v32_v42 = vld [vmem:[%s5579_s0] sm:$0xff]  ;;  %p4406_p3 = por %p4405_p2, %p4404_p1 }
  0x17   :  { %v73_v43 = vrot.slane %v32_v42, %v72_v41  ;;  %v66_v46 = vcombine.high %v32_v42, %v32_v42 }
  0x18   :  { %182 = vperm.xlu1 %3861, %v38_v20   ;;  %p4407_p4 = pnand %p4406_p3, %p4400_p0 }
  0x19   :  { %v81_v44 = vcombine.high %v73_v43, %v73_v43  ;;  %v80_v47 = vrot.slane %v66_v46, %v72_v41  ;;  %v4612_v51 = vrot.slane %v73_v43, %v72_v41  ;;  %v4719_v46 = vld [vmem:[%s5583_s4] sm:$0xff] }
  0x1a   :  { %187 = vperm.xlu0 %3860, %v39_v21   ;;  %3492 = vmatprep.mubr.msk.f32.mxu1 %vm597_vm1, %v4719_v46 }
  0x1b   :  { %v103_v45 = vrot.slane %v81_v44, %v72_v41  ;;  %v96_v48 = vrot.slane %v80_v47, %v72_v41  ;;  %v82_v49 = vcombine.high %v80_v47, %v80_v47  ;;  %v111_v53 = vcombine.high %v4612_v51, %v4612_v51 }
  0x1c   :  { %192 = vperm.xlu1 %3861, %v40_v22  }
  0x1d   :  { %v110_v50 = vrot.slane %v82_v49, %v72_v41  ;;  %v113_v54 = vcombine.high %v103_v45, %v103_v45  ;;  %v112_v55 = vcombine.high %v96_v48, %v96_v48  ;;  %v4619_v57 = vrot.slane %v103_v45, %v4614_v52 }
  0x1e   :  { %289 = vperm.xlu0 %3860, %v263_v23   ;;  %v4622_v58 = vrot.slane %v111_v53, %v4614_v52  ;;  %v4628_v60 = vrot.slane %v96_v48, %v4614_v52 }
  0x1f   :  { %v114_v56 = vcombine.high %v110_v50, %v110_v50  ;;  %v4625_v59 = vrot.slane %v113_v54, %v4614_v52  ;;  %v4631_v61 = vrot.slane %v110_v50, %v4614_v52  ;;  %v4634_v62 = vrot.slane %v112_v55, %v4614_v52 }
  0x20   :  { %294 = vperm.xlu1 %3861, %v264_v24  }
  0x21   :  { %v4637_v63 = vrot.slane %v114_v56, %v4614_v52 }
  0x22   :  { %299 = vperm.xlu0 %3860, %v265_v25  }
  0x24   :  { %304 = vperm.xlu1 %3861, %v266_v26  }
  0x26   :  { %559 = vperm.xlu0 %3860, %v57_v27  }
  0x28   :  { %564 = vperm.xlu1 %3861, %v58_v28  }
  0x2a   :  { %569 = vperm.xlu0 %3860, %v59_v29  }
  0x2c   :  { %574 = vperm.xlu1 %3861, %v60_v30  }
  0x2e   :  { %579 = vperm.xlu0 %3860, %v61_v31  }
  0x30   :  { %584 = vperm.xlu1 %3861, %v62_v32  }
  0x32   :  { %589 = vperm.xlu0 %3860, %v63_v33  }
  0x34   :  { %594 = vperm.xlu1 %3861, %v64_v34  }
  0x36   :  { %2977 = vperm.xlu0 %3860, %v2974_v35  }
  0x85   :  { %v4639_v0 = vpop.permute.xlu0 %157 }
  0x86   :  { %v203_v5 = vmul.f32 %v4639_v0, %v4619_v57  ;;  %v211_v6 = vmul.f32 %v4639_v0, %v4622_v58  ;;  %v219_v7 = vmul.f32 %v4639_v0, %v4625_v59  ;;  %v227_v11 = vmul.f32 %v4639_v0, %v4628_v60 }
  0x87   :  { %v4647_v9 = vpop.permute.xlu1 %167  ;;  %v235_v13 = vmul.f32 %v4639_v0, %v4631_v61  ;;  %v243_v15 = vmul.f32 %v4639_v0, %v4634_v62  ;;  %v251_v17 = vmul.f32 %v4639_v0, %v4637_v63 }
  0x88   :  { %v205_v18 = vmul.f32 %v4647_v9, %v4619_v57  ;;  %v213_v19 = vmul.f32 %v4647_v9, %v4622_v58  ;;  %v221_v20 = vmul.f32 %v4647_v9, %v4625_v59  ;;  %v229_v22 = vmul.f32 %v4647_v9, %v4628_v60 }
  0x89   :  { %v4663_v21 = vpop.permute.xlu0 %162  ;;  %v237_v23 = vmul.f32 %v4647_v9, %v4631_v61  ;;  %v245_v24 = vmul.f32 %v4647_v9, %v4634_v62  ;;  %v253_v25 = vmul.f32 %v4647_v9, %v4637_v63 }
  0x8a   :  { %v204_v26 = vmul.f32 %v4663_v21, %v4619_v57  ;;  %v212_v27 = vmul.f32 %v4663_v21, %v4622_v58  ;;  %v220_v28 = vmul.f32 %v4663_v21, %v4625_v59  ;;  %v228_v30 = vmul.f32 %v4663_v21, %v4628_v60 }
  0x8b   :  { %v4679_v29 = vpop.permute.xlu1 %172  ;;  %v236_v31 = vmul.f32 %v4663_v21, %v4631_v61  ;;  %v244_v32 = vmul.f32 %v4663_v21, %v4634_v62  ;;  %v252_v33 = vmul.f32 %v4663_v21, %v4637_v63 }
  0x8c   :  { %v206_v34 = vmul.f32 %v4679_v29, %v4619_v57  ;;  %v214_v35 = vmul.f32 %v4679_v29, %v4622_v58  ;;  %v222_v36 = vmul.f32 %v4679_v29, %v4625_v59  ;;  %v230_v38 = vmul.f32 %v4679_v29, %v4628_v60 }
  0x8d   :  { %v4695_v37 = vpop.permute.xlu0 %269  ;;  %v238_v39 = vmul.f32 %v4679_v29, %v4631_v61  ;;  %v246_v40 = vmul.f32 %v4679_v29, %v4634_v62  ;;  %v254_v41 = vmul.f32 %v4679_v29, %v4637_v63 }
  0x8e   :  { %v4706_v42 = vadd.f32 %v4695_v37, %v203_v5  ;;  %v4709_v43 = vadd.f32 %v4695_v37, %v211_v6  ;;  %v4712_v44 = vadd.f32 %v4695_v37, %v219_v7  ;;  %v4722_v47 = vadd.f32 %v4695_v37, %v227_v11 }
  0x8f   :  { %v4714_v45 = vpop.permute.xlu1 %274  ;;  %v4725_v48 = vadd.f32 %v4695_v37, %v235_v13  ;;  %v4728_v49 = vadd.f32 %v4695_v37, %v243_v15 }
  0x90   :  { %5591 = vst [vmem:[#allocation7_spill] sm:$0xff] %v4709_v43  ;;  %5592 = vst [vmem:[#allocation8_spill] sm:$0xff] %v4712_v44  ;;  %v4733_v50 = vadd.f32 %v4714_v45, %v204_v26  ;;  %v4736_v53 = vadd.f32 %v4714_v45, %v212_v27  ;;  %v4739_v54 = vadd.f32 %v4714_v45, %v220_v28 }
  0x91   :  { %5593 = vst [vmem:[#allocation9_spill] sm:$0xff] %v4722_v47  ;;  %5594 = vst [vmem:[#allocation10_spill] sm:$0xff] %v4725_v48  ;;  %v4741_v55 = vpop.permute.xlu0 %279  ;;  %v4744_v56 = vadd.f32 %v4714_v45, %v228_v30  ;;  %v4747_v5 = vadd.f32 %v4714_v45, %v236_v31  ;;  %v4750_v6 = vadd.f32 %v4714_v45, %v244_v32 }
  0x92   :  { %5595 = vst [vmem:[#allocation11_spill] sm:$0xff] %v4728_v49  ;;  %5596 = vst [vmem:[#allocation12_spill] sm:$0xff] %v4736_v53  ;;  %v4753_v7 = vadd.f32 %v4714_v45, %v252_v33  ;;  %v4756_v11 = vadd.f32 %v4741_v55, %v205_v18  ;;  %v4759_v13 = vadd.f32 %v4741_v55, %v213_v19 }
  0x93   :  { %5597 = vst [vmem:[#allocation13_spill] sm:$0xff] %v4739_v54  ;;  %5598 = vst [vmem:[#allocation14_spill] sm:$0xff] %v4744_v56  ;;  %v4762_v15 = vadd.f32 %v4741_v55, %v221_v20  ;;  %v4764_v26 = vpop.permute.xlu1 %284  ;;  %v4767_v27 = vadd.f32 %v4741_v55, %v229_v22  ;;  %v4770_v28 = vadd.f32 %v4741_v55, %v237_v23 }
  0x94   :  { %5599 = vst [vmem:[#allocation15_spill] sm:$0xff] %v4747_v5  ;;  %5600 = vst [vmem:[#allocation16_spill] sm:$0xff] %v4750_v6  ;;  %v4773_v30 = vadd.f32 %v4741_v55, %v245_v24  ;;  %v4776_v18 = vadd.f32 %v4695_v37, %v251_v17  ;;  %v4779_v19 = vadd.f32 %v4764_v26, %v206_v34 }
  0x95   :  { %5601 = vst [vmem:[#allocation17_spill] sm:$0xff] %v4753_v7  ;;  %5602 = vst [vmem:[#allocation18_spill] sm:$0xff] %v4759_v13  ;;  %v4782_v20 = vadd.f32 %v4764_v26, %v214_v35  ;;  %v4785_v31 = vadd.f32 %v4764_v26, %v222_v36  ;;  %v4787_v22 = vpop.permute.xlu0 %177  ;;  %v4790_v23 = vadd.f32 %v4764_v26, %v230_v38 }
  0x96   :  { %5603 = vst [vmem:[#allocation19_spill] sm:$0xff] %v4762_v15  ;;  %5604 = vst [vmem:[#allocation20_spill] sm:$0xff] %v4767_v27  ;;  %v4793_v24 = vadd.f32 %v4764_v26, %v238_v39  ;;  %v4796_v17 = vadd.f32 %v4764_v26, %v246_v40  ;;  %v4799_v32 = vadd.f32 %v4764_v26, %v254_v41 }
  0x97   :  { %5605 = vst [vmem:[#allocation21_spill] sm:$0xff] %v4770_v28  ;;  %5606 = vst [vmem:[#allocation22_spill] sm:$0xff] %v4773_v30  ;;  %v207_v33 = vmul.f32 %v4787_v22, %v4619_v57  ;;  %v215_v34 = vmul.f32 %v4787_v22, %v4622_v58  ;;  %v223_v35 = vmul.f32 %v4787_v22, %v4625_v59  ;;  %v4807_v36 = vpop.permute.xlu1 %182 }
  0x98   :  { %5607 = vst [vmem:[#allocation23_spill] sm:$0xff] %v4776_v18  ;;  %5608 = vst [vmem:[#allocation24_spill] sm:$0xff] %v4782_v20  ;;  %v231_v38 = vmul.f32 %v4787_v22, %v4628_v60  ;;  %v239_v39 = vmul.f32 %v4787_v22, %v4631_v61  ;;  %v247_v40 = vmul.f32 %v4787_v22, %v4634_v62 }
  0x99   :  { %5609 = vst [vmem:[#allocation25_spill] sm:$0xff] %v4785_v31  ;;  %5610 = vst [vmem:[#allocation26_spill] sm:$0xff] %v4790_v23  ;;  %v4816_v41 = vadd.f32 %v4741_v55, %v253_v25  ;;  %v208_v3 = vmul.f32 %v4807_v36, %v4619_v57  ;;  %v224_v18 = vmul.f32 %v4807_v36, %v4625_v59  ;;  %v4824_v7 = vpop.permute.xlu0 %187 }
  0x9a   :  { %5611 = vst [vmem:[#allocation27_spill] sm:$0xff] %v4793_v24  ;;  %5612 = vst [vmem:[#allocation28_spill] sm:$0xff] %v4796_v17  ;;  %v232_v30 = vmul.f32 %v4807_v36, %v4628_v60  ;;  %v240_v17 = vmul.f32 %v4807_v36, %v4631_v61  ;;  %v248_v25 = vmul.f32 %v4807_v36, %v4634_v62 }
  0x9b   :  { %5613 = vst [vmem:[#allocation29_spill] sm:$0xff] %v4799_v32  ;;  %5614 = vst [vmem:[#allocation30_spill] sm:$0xff] %v4816_v41  ;;  %v216_v32 = vmul.f32 %v4807_v36, %v4622_v58  ;;  %v256_v41 = vmul.f32 %v4807_v36, %v4637_v63  ;;  %v209_v49 = vmul.f32 %v4824_v7, %v4619_v57  ;;  %v4840_v24 = vpop.permute.xlu1 %192 }
  0x9c   :  { %v217_v6 = vmul.f32 %v4824_v7, %v4622_v58  ;;  %v225_v28 = vmul.f32 %v4824_v7, %v4625_v59  ;;  %v233_v48 = vmul.f32 %v4824_v7, %v4628_v60  ;;  %v241_v5 = vmul.f32 %v4824_v7, %v4631_v61 }
  0x9d   :  { %v249_v27 = vmul.f32 %v4824_v7, %v4634_v62  ;;  %v255_v23 = vmul.f32 %v4787_v22, %v4637_v63  ;;  %v210_v47 = vmul.f32 %v4840_v24, %v4619_v57  ;;  %v218_v56 = vmul.f32 %v4840_v24, %v4622_v58  ;;  %v4856_v31 = vpop.permute.xlu0 %289 }
  0x9e   :  { %v226_v15 = vmul.f32 %v4840_v24, %v4625_v59  ;;  %v234_v44 = vmul.f32 %v4840_v24, %v4628_v60  ;;  %v242_v54 = vmul.f32 %v4840_v24, %v4631_v61  ;;  %v250_v13 = vmul.f32 %v4840_v24, %v4634_v62 }
  0x9f   :  { %v258_v57 = vmul.f32 %v4840_v24, %v4637_v63  ;;  %v4867_v20 = vadd.f32 %v4856_v31, %v207_v33  ;;  %v4870_v58 = vadd.f32 %v4856_v31, %v215_v34  ;;  %v4873_v59 = vadd.f32 %v4856_v31, %v223_v35  ;;  %v295_v43 = vpop.permute.xlu1 %294 }
  0xa0   :  { %v4876_v60 = vadd.f32 %v4856_v31, %v231_v38  ;;  %v4879_v61 = vadd.f32 %v4856_v31, %v239_v39  ;;  %v4882_v62 = vadd.f32 %v4856_v31, %v247_v40  ;;  %v4885_v53 = vadd.f32 %v4856_v31, %v255_v23 }
  0xa1   :  { %5615 = vst [vmem:[#allocation31_spill] sm:$0xff] %v4870_v58  ;;  %5616 = vst [vmem:[#allocation32_spill] sm:$0xff] %v4873_v59  ;;  %v4887_v33 = vadd.f32 %v295_v43, %v208_v3  ;;  %v4889_v34 = vadd.f32 %v295_v43, %v216_v32  ;;  %v4891_v58 = vadd.f32 %v295_v43, %v224_v18  ;;  %v300_v35 = vpop.permute.xlu0 %299 }
  0xa2   :  { %5617 = vst [vmem:[#allocation33_spill] sm:$0xff] %v4876_v60  ;;  %5618 = vst [vmem:[#allocation34_spill] sm:$0xff] %v4882_v62  ;;  %v4893_v59 = vadd.f32 %v295_v43, %v232_v30  ;;  %v4895_v38 = vadd.f32 %v295_v43, %v240_v17  ;;  %v4897_v60 = vadd.f32 %v295_v43, %v248_v25 }
  0xa3   :  { %5619 = vst [vmem:[#allocation35_spill] sm:$0xff] %v4885_v53  ;;  %v4899_v39 = vadd.f32 %v295_v43, %v256_v41  ;;  %v4901_v40 = vadd.f32 %v300_v35, %v209_v49  ;;  %v4903_v62 = vadd.f32 %v300_v35, %v217_v6  ;;  %v4905_v23 = vadd.f32 %v300_v35, %v225_v28  ;;  %v305_v3 = vpop.permute.xlu1 %304 }
  0xa4   :  { %v4907_v32 = vadd.f32 %v300_v35, %v233_v48  ;;  %v4909_v18 = vadd.f32 %v300_v35, %v241_v5  ;;  %v4911_v53 = vadd.f32 %v300_v35, %v249_v27  ;;  %v257_v30 = vmul.f32 %v4824_v7, %v4637_v63 }
  0xa5   :  { %5620 = vst [vmem:[#allocation36_spill] sm:$0xff] %v4899_v39  ;;  %v4915_v17 = vadd.f32 %v305_v3, %v210_v47  ;;  %v4917_v41 = vadd.f32 %v305_v3, %v218_v56  ;;  %v4919_v49 = vadd.f32 %v305_v3, %v226_v15  ;;  %v4921_v6 = vadd.f32 %v305_v3, %v234_v44 }
  0xa6   :  { %5621 = vst [vmem:[#allocation37_spill] sm:$0xff] %v4911_v53  ;;  %v4923_v28 = vadd.f32 %v305_v3, %v242_v54  ;;  %v4925_v25 = vadd.f32 %v305_v3, %v250_v13  ;;  %v4927_v48 = vadd.f32 %v305_v3, %v258_v57  ;;  %v4929_v5 = vadd.f32 %v300_v35, %v257_v30 }
  0xa7   :  { %v118_v27 = vrot.slane %v4612_v51, %v4614_v52 }
  0xa8   :  { %5622 = vst [vmem:[#allocation38_spill] sm:$0xff] %v4925_v25  ;;  %5623 = vst [vmem:[#allocation39_spill] sm:$0xff] %v4927_v48 }
  0xa9   :  { %5624 = vst [vmem:[#allocation40_spill] sm:$0xff] %v4929_v5  ;;  %v196_v63 = vmul.f32 %v4663_v21, %v118_v27  ;;  %v195_v47 = vmul.f32 %v4639_v0, %v118_v27  ;;  %v198_v44 = vmul.f32 %v4679_v29, %v118_v27  ;;  %v197_v13 = vmul.f32 %v4647_v9, %v118_v27 }
  0xaa   :  { %v200_v29 = vmul.f32 %v4807_v36, %v118_v27 }
  0xab   :  { %v308_v56 = vadd.f32 %v4714_v45, %v196_v63  ;;  %v307_v54 = vadd.f32 %v4695_v37, %v195_v47  ;;  %v310_v39 = vadd.f32 %v4764_v26, %v198_v44  ;;  %v309_v21 = vadd.f32 %v4741_v55, %v197_v13 }
  0xac   :  { %v199_v37 = vmul.f32 %v4787_v22, %v118_v27  ;;  %v202_v47 = vmul.f32 %v4840_v24, %v118_v27  ;;  %v201_v26 = vmul.f32 %v4824_v7, %v118_v27  ;;  %v312_v44 = vadd.f32 %v295_v43, %v200_v29 }
  0xd9   :  { %v3478_v15 = vpop.f32.mrb[0].mxu0 }
  0xda   :  { %v502_v57 = vadd.f32 %v3478_v15, %v308_v56  ;;  %v462_v48 = vpop.f32.mrb[1].mxu0 }
  0xdb   :  { %v501_v30 = vadd.f32 %v462_v48, %v307_v54  ;;  %v313_v54 = vadd.f32 %v300_v35, %v201_v26 }
  0xdc   :  { %v3082_v5 = vmul.f32 -1.442695, %v502_v57 }
  0xdd   :  { %v3081_v51 = vmul.f32 -1.442695, %v501_v30  ;;  %v3481_v52 = vpop.f32.mrb[2].mxu0 }
  0xde   :  { %3863 = vpow2.f32 %v3082_v5  ;;  %v504_v0 = vadd.f32 %v3481_v52, %v310_v39  ;;  %v472_v45 = vpop.f32.mrb[3].mxu0  ;;  %v311_v52 = vadd.f32 %v4856_v31, %v199_v37  ;;  %v314_v39 = vadd.f32 %v305_v3, %v202_v47 }
  0xdf   :  { %3865 = vpow2.f32 %v3081_v51  ;;  %v503_v63 = vadd.f32 %v472_v45, %v309_v21 }
  0xe0   :  { %v3084_v9 = vmul.f32 -1.442695, %v504_v0 }
  0xe1   :  { %v3083_v48 = vmul.f32 -1.442695, %v503_v63  ;;  %v3484_v56 = vpop.f32.mrb[4].mxu0 }
  0xe2   :  { %3867 = vpow2.f32 %v3084_v9  ;;  %v482_v15 = vpop.f32.mrb[5].mxu0  ;;  %v506_v55 = vadd.f32 %v3484_v56, %v312_v44 }
  0xe3   :  { %3869 = vpow2.f32 %v3083_v48  ;;  %v505_v36 = vadd.f32 %v482_v15, %v311_v52 }
  0xe4   :  { %3871 = vtanh.f32 %v506_v55 }
  0xe5   :  { %v3487_v5 = vpop.f32.mrb[6].mxu0  ;;  %3873 = vtanh.f32 %v505_v36 }
  0xe6   :  { %v508_v13 = vadd.f32 %v3487_v5, %v314_v39  ;;  %v492_v22 = vpop.f32.mrb[7].mxu0 }
  0xe7   :  { %v507_v57 = vadd.f32 %v492_v22, %v313_v54 }
  0xe8   :  { %v3864_v30 = vpop.eup %3863  ;;  %v3086_v24 = vmul.f32 -1.442695, %v508_v13 }
  0xe9   :  { %v3866_v51 = vpop.eup %3865  ;;  %v516_v21 = vadd.f32 1.0, %v3864_v30  ;;  %v3085_v7 = vmul.f32 -1.442695, %v507_v57 }
  0xea   :  { %v515_v43 = vadd.f32 1.0, %v3866_v51  ;;  %3875 = vpow2.f32 %v3086_v24  ;;  %v4955_v51 = vld [vmem:[%s5583_s4 + $0x8] sm:$0xff] }
  0xeb   :  { %3877 = vrcp.f32 %v516_v21  ;;  %v4960_v21 = vld [vmem:[%s5583_s4 + $0x10] sm:$0xff] }
  0xec   :  { %v3868_v27 = vpop.eup %3867  ;;  %3879 = vrcp.f32 %v515_v43  ;;  %v4978_v43 = vld [vmem:[%s5583_s4 + $0x20] sm:$0xff] }
  0xed   :  { %v3870_v31 = vpop.eup %3869  ;;  %v528_v3 = vadd.f32 1.0, %v3868_v27  ;;  %3881 = vpow2.f32 %v3085_v7  ;;  %v4973_v7 = vld [vmem:[%s5583_s4 + $0x18] sm:$0xff]  ;;  %v4991_v27 = vld [vmem:[%s5583_s4 + $0x28] sm:$0xff] }
  0xee   :  { %v527_v0 = vadd.f32 1.0, %v3870_v31  ;;  %v3872_v35 = vpop.eup %3871  ;;  %v4996_v31 = vld [vmem:[%s5583_s4 + $0x30] sm:$0xff] }
  0xef   :  { %3883 = vrcp.f32 %v528_v3  ;;  %v3874_v45 = vpop.eup %3873  ;;  %v5009_v3 = vld [vmem:[%s5583_s4 + $0x38] sm:$0xff] }
  0xf0   :  { %3885 = vrcp.f32 %v527_v0  ;;  %v5019_v0 = vpop.permute.xlu1 %564 }
  0xf4   :  { %v3876_v29 = vpop.eup %3875 }
  0xf5   :  { %v3878_v63 = vpop.eup %3877  ;;  %v542_v56 = vadd.f32 1.0, %v3876_v29 }
  0xf6   :  { %v3880_v37 = vpop.eup %3879  ;;  %v550_v9 = vmul.f32 %v3878_v63, %v3872_v35  ;;  %v5021_v35 = vpop.permute.xlu0 %559 }
  0xf7   :  { %v3882_v47 = vpop.eup %3881  ;;  %v549_v48 = vmul.f32 %v3880_v37, %v3874_v45  ;;  %3887 = vrcp.f32 %v542_v56  ;;  %v5023_v45 = vpop.permute.xlu1 %574 }
  0xf8   :  { %v541_v44 = vadd.f32 1.0, %v3882_v47 }
  0xf9   :  { %v3884_v26 = vpop.eup %3883 }
  0xfa   :  { %v3886_v15 = vpop.eup %3885  ;;  %v548_v52 = vmul.f32 0.0, %v3884_v26  ;;  %3889 = vrcp.f32 %v541_v44  ;;  %v5029_v44 = vpop.permute.xlu0 %569 }
  0xfb   :  { %v547_v55 = vmul.f32 0.0, %v3886_v15  ;;  %v5031_v15 = vpop.permute.xlu1 %584 }
  0xfc   :  { %v4946_v39 = vadd.f32 %v550_v9, %v548_v52 }
  0xfd   :  { %v4948_v36 = vadd.f32 %v549_v48, %v547_v55 }
  0xfe   :  { %3891 = vtanh.f32 %v4946_v39 }
  0xff   :  { %3893 = vtanh.f32 %v4948_v36 }
 0x101   :  { %v3888_v5 = vpop.eup %3887 }
 0x104   :  { %v3890_v54 = vpop.eup %3889 }
 0x108   :  { %v3892_v13 = vpop.eup %3891 }
 0x109   :  { %v3894_v22 = vpop.eup %3893  ;;  %v556_v57 = vmul.f32 %v3892_v13, %v3888_v5 }
 0x10a   :  { %v555_v30 = vmul.f32 %v3894_v22, %v3890_v54 }
 0x10c   :  { %v3763_v24 = vpack.c.bf16 %v556_v57, %v555_v30 }
 0x10e   :  { %3764 = vmatprep.subr.bf16.mxu1 %v3763_v24  ;;  %3768 = vmatprep.subr.bf16.mxu0 %v3763_v24 }
 0x10f   :  { %3766 = vmatpush3.bf16.msra.mxu1 %v3763_v24  ;;  %3770 = vmatpush3.bf16.msra.mxu0 %v3763_v24 }
 0x112   :  { %3493 = vmatmul.mubr.msk.f32.vlgmr.msra.gmra.mrb[0].mxu1 %vm597_vm1, %v4955_v51  ;;  %3509 = vmatmul.mubr.msk.f32.vlgmr.msra.gmra.mrb[8].mxu0 %vm371_vm0, %v4485_v2 }
 0x113   :  { %3495 = vmatprep.mubr.msk.f32.mxu1 %vm597_vm1, %v4960_v21  ;;  %3511 = vmatprep.mubr.msk.f32.mxu0 %vm371_vm0, %v4493_v4 }
 0x116   :  { %3496 = vmatmul.mubr.msk.f32.gmra.mrb[2].mxu1 %vm597_vm1, %v4973_v7  ;;  %3512 = vmatmul.mubr.msk.f32.gmra.mrb[10].mxu0 %vm371_vm0, %v4509_v8 }
 0x117   :  { %3498 = vmatprep.mubr.msk.f32.mxu1 %vm597_vm1, %v4978_v43  ;;  %3514 = vmatprep.mubr.msk.f32.mxu0 %vm371_vm0, %v4517_v10 }
 0x11a   :  { %3499 = vmatmul.mubr.msk.f32.gmra.mrb[4].mxu1 %vm597_vm1, %v4991_v27  ;;  %3515 = vmatmul.mubr.msk.f32.gmra.mrb[12].mxu0 %vm371_vm0, %v4529_v12 }
 0x11b   :  { %3501 = vmatprep.mubr.msk.f32.mxu1 %vm597_vm1, %v4996_v31  ;;  %3517 = vmatprep.mubr.msk.f32.mxu0 %vm371_vm0, %v4537_v14 }
 0x11e   :  { %3502 = vmatmul.mubr.msk.f32.gmra.mrb[6].mxu1 %vm597_vm1, %v5009_v3  ;;  %3518 = vmatmul.mubr.msk.f32.gmra.mrb[14].mxu0 %vm371_vm0, %v4549_v16 }
 0x11f   :  { %3544 = vmatprep.mubr.msk.f32.mxu0 %vm371_vm0, %v4480_v1  ;;  %3528 = vmatprep.mubr.msk.f32.mxu1 %vm597_vm1, %v4719_v46 }
 0x1e5   :  { %v3494_v29 = vpop.f32.mrb[0].mxu1  ;;  %v3510_v63 = vpop.f32.mrb[8].mxu0 }
 0x1e6   :  { %v694_v37 = vadd.f32 %v3494_v29, %v5019_v0  ;;  %v881_v9 = vadd.f32 %v3510_v63, %v4733_v50  ;;  %v688_v47 = vpop.f32.mrb[1].mxu1  ;;  %v841_v48 = vpop.f32.mrb[9].mxu0 }
 0x1e7   :  { %v689_v56 = vadd.f32 %v688_v47, %v5021_v35  ;;  %v880_v26 = vadd.f32 %v841_v48, %v4706_v42 }
 0x1e8   :  { %v3096_v52 = vmul.f32 -1.442695, %v694_v37  ;;  %v3110_v55 = vmul.f32 -1.442695, %v881_v9 }
 0x1e9   :  { %v3095_v5 = vmul.f32 -1.442695, %v689_v56  ;;  %v3109_v54 = vmul.f32 -1.442695, %v880_v26  ;;  %v3497_v13 = vpop.f32.mrb[2].mxu1  ;;  %v3513_v22 = vpop.f32.mrb[10].mxu0 }
 0x1ea   :  { %3895 = vpow2.f32 %v3096_v52  ;;  %v704_v57 = vadd.f32 %v3497_v13, %v5023_v45  ;;  %v883_v50 = vadd.f32 %v3513_v22, %v4779_v19  ;;  %v698_v30 = vpop.f32.mrb[3].mxu1  ;;  %v851_v24 = vpop.f32.mrb[11].mxu0 }
 0x1eb   :  { %3897 = vpow2.f32 %v3110_v55  ;;  %v699_v42 = vadd.f32 %v698_v30, %v5029_v44  ;;  %v882_v29 = vadd.f32 %v851_v24, %v4756_v11  ;;  %v5039_v55 = vpop.permute.xlu0 %579 }
 0x1ec   :  { %3899 = vpow2.f32 %v3095_v5  ;;  %v3098_v63 = vmul.f32 -1.442695, %v704_v57  ;;  %v3112_v37 = vmul.f32 -1.442695, %v883_v50  ;;  %v5042_v5 = vpop.permute.xlu1 %594 }
 0x1ed   :  { %3901 = vpow2.f32 %v3109_v54  ;;  %v3097_v9 = vmul.f32 -1.442695, %v699_v42  ;;  %v3111_v47 = vmul.f32 -1.442695, %v882_v29  ;;  %v3500_v48 = vpop.f32.mrb[4].mxu1  ;;  %v3516_v56 = vpop.f32.mrb[12].mxu0 }
 0x1ee   :  { %3903 = vpow2.f32 %v3098_v63  ;;  %v714_v26 = vadd.f32 %v3500_v48, %v5031_v15  ;;  %v885_v19 = vadd.f32 %v3516_v56, %v4887_v33  ;;  %v708_v52 = vpop.f32.mrb[5].mxu1  ;;  %v861_v13 = vpop.f32.mrb[13].mxu0 }
 0x1ef   :  { %3905 = vpow2.f32 %v3112_v37  ;;  %v884_v11 = vadd.f32 %v861_v13, %v4867_v20  ;;  %v709_v54 = vadd.f32 %v708_v52, %v5039_v55  ;;  %v5048_v56 = vpop.permute.xlu0 %589 }
 0x1f0   :  { %3907 = vpow2.f32 %v3097_v9 }
 0x1f1   :  { %3909 = vpow2.f32 %v3111_v47  ;;  %v3503_v22 = vpop.f32.mrb[6].mxu1  ;;  %v3519_v57 = vpop.f32.mrb[14].mxu0 }
 0x1f2   :  { %3911 = vtanh.f32 %v714_v26  ;;  %v724_v50 = vadd.f32 %v3503_v22, %v5042_v5  ;;  %v887_v33 = vadd.f32 %v3519_v57, %v4915_v17  ;;  %v718_v30 = vpop.f32.mrb[7].mxu1  ;;  %v871_v24 = vpop.f32.mrb[15].mxu0 }
 0x1f3   :  { %3913 = vtanh.f32 %v885_v19  ;;  %v886_v42 = vadd.f32 %v871_v24, %v4901_v40  ;;  %v719_v19 = vadd.f32 %v718_v30, %v5048_v56 }
 0x1f4   :  { %v3896_v29 = vpop.eup %3895  ;;  %3915 = vtanh.f32 %v709_v54  ;;  %v3100_v20 = vmul.f32 -1.442695, %v724_v50  ;;  %v3114_v50 = vmul.f32 -1.442695, %v887_v33 }
 0x1f5   :  { %v3898_v63 = vpop.eup %3897  ;;  %v734_v37 = vadd.f32 1.0, %v3896_v29  ;;  %3917 = vtanh.f32 %v884_v11 }
 0x1f6   :  { %v3900_v9 = vpop.eup %3899  ;;  %v895_v47 = vadd.f32 1.0, %v3898_v63  ;;  %3919 = vpow2.f32 %v3100_v20  ;;  %v3099_v20 = vmul.f32 -1.442695, %v719_v19 }
 0x1f7   :  { %v3902_v48 = vpop.eup %3901  ;;  %3921 = vrcp.f32 %v734_v37  ;;  %v733_v26 = vadd.f32 1.0, %v3900_v9  ;;  %v3113_v37 = vmul.f32 -1.442695, %v886_v42 }
 0x1f8   :  { %v3904_v17 = vpop.eup %3903  ;;  %3923 = vrcp.f32 %v895_v47  ;;  %v894_v52 = vadd.f32 1.0, %v3902_v48 }
 0x1f9   :  { %v3906_v40 = vpop.eup %3905  ;;  %3925 = vrcp.f32 %v733_v26  ;;  %v746_v13 = vadd.f32 1.0, %v3904_v17 }
 0x1fa   :  { %v3908_v54 = vpop.eup %3907  ;;  %3927 = vrcp.f32 %v894_v52  ;;  %v907_v22 = vadd.f32 1.0, %v3906_v40 }
 0x1fb   :  { %v3910_v11 = vpop.eup %3909  ;;  %3929 = vrcp.f32 %v746_v13  ;;  %v745_v57 = vadd.f32 1.0, %v3908_v54 }
 0x1fc   :  { %v3912_v24 = vpop.eup %3911  ;;  %3931 = vrcp.f32 %v907_v22  ;;  %v906_v29 = vadd.f32 1.0, %v3910_v11 }
 0x1fd   :  { %v3914_v63 = vpop.eup %3913  ;;  %3933 = vrcp.f32 %v745_v57 }
 0x1fe   :  { %v3916_v9 = vpop.eup %3915  ;;  %3935 = vrcp.f32 %v906_v29 }
 0x1ff   :  { %v3918_v30 = vpop.eup %3917  ;;  %3937 = vpow2.f32 %v3114_v50 }
 0x200   :  { %v3920_v47 = vpop.eup %3919  ;;  %3939 = vpow2.f32 %v3099_v20 }
 0x201   :  { %v3922_v48 = vpop.eup %3921  ;;  %3941 = vpow2.f32 %v3113_v37  ;;  %v760_v19 = vadd.f32 1.0, %v3920_v47 }
 0x202   :  { %v3924_v26 = vpop.eup %3923  ;;  %v768_v17 = vmul.f32 %v3922_v48, %v3912_v24 }
 0x203   :  { %v3926_v52 = vpop.eup %3925  ;;  %v929_v40 = vmul.f32 %v3924_v26, %v3914_v63  ;;  %3943 = vrcp.f32 %v760_v19 }
 0x204   :  { %v3928_v33 = vpop.eup %3927  ;;  %v767_v13 = vmul.f32 %v3926_v52, %v3916_v9 }
 0x205   :  { %v3930_v54 = vpop.eup %3929  ;;  %v928_v22 = vmul.f32 %v3928_v33, %v3918_v30 }
 0x206   :  { %v3932_v11 = vpop.eup %3931  ;;  %v766_v57 = vmul.f32 0.0, %v3930_v54 }
 0x207   :  { %v3934_v42 = vpop.eup %3933  ;;  %v927_v29 = vmul.f32 %v3932_v11, %v4946_v39 }
 0x208   :  { %v3936_v53 = vpop.eup %3935  ;;  %v765_v50 = vmul.f32 0.0, %v3934_v42  ;;  %v5052_v25 = vadd.f32 %v768_v17, %v766_v57 }
 0x209   :  { %v3938_v20 = vpop.eup %3937  ;;  %v926_v37 = vmul.f32 %v3936_v53, %v4948_v36  ;;  %v5055_v24 = vadd.f32 %v929_v40, %v927_v29 }
 0x20a   :  { %v3940_v63 = vpop.eup %3939  ;;  %3945 = vtanh.f32 %v5052_v25  ;;  %v5058_v9 = vadd.f32 %v767_v13, %v765_v50  ;;  %v921_v30 = vadd.f32 1.0, %v3938_v20 }
 0x20b   :  { %v3942_v47 = vpop.eup %3941  ;;  %3947 = vtanh.f32 %v5055_v24  ;;  %v5061_v39 = vadd.f32 %v928_v22, %v926_v37  ;;  %v759_v48 = vadd.f32 1.0, %v3940_v63 }
 0x20c   :  { %3949 = vtanh.f32 %v5058_v9  ;;  %v920_v26 = vadd.f32 1.0, %v3942_v47 }
 0x20d   :  { %3951 = vtanh.f32 %v5061_v39  ;;  %v3944_v53 = vpop.eup %3943 }
 0x20e   :  { %3953 = vrcp.f32 %v921_v30 }
 0x20f   :  { %3955 = vrcp.f32 %v759_v48 }
 0x210   :  { %3957 = vrcp.f32 %v920_v26  ;;  %v5628_v26 = vld [vmem:[#allocation18_spill] sm:$0xff] }
 0x214   :  { %v3946_v36 = vpop.eup %3945 }
 0x215   :  { %v3948_v17 = vpop.eup %3947  ;;  %v774_v13 = vmul.f32 %v3946_v36, %v3944_v53 }
 0x216   :  { %v3950_v52 = vpop.eup %3949 }
 0x217   :  { %v3952_v40 = vpop.eup %3951 }
 0x218   :  { %v3954_v33 = vpop.eup %3953 }
 0x219   :  { %v3956_v54 = vpop.eup %3955  ;;  %v935_v19 = vmul.f32 %v3954_v33, %v3948_v17 }
 0x21a   :  { %v3958_v22 = vpop.eup %3957  ;;  %v773_v11 = vmul.f32 %v3956_v54, %v3950_v52 }
 0x21b   :  { %v934_v57 = vmul.f32 %v3958_v22, %v3952_v40 }
 0x21c   :  { %v3775_v42 = vpack.c.bf16 %v774_v13, %v773_v11 }
 0x21d   :  { %v3771_v29 = vpack.c.bf16 %v935_v19, %v934_v57 }
 0x21f   :  { %3772 = vmatprep.subr.bf16.mxu1 %v3771_v29  ;;  %3780 = vmatprep.subr.bf16.mxu0 %v3771_v29 }
 0x220   :  { %3774 = vmatpush3.bf16.msra.mxu1 %v3771_v29  ;;  %3782 = vmatpush3.bf16.msra.mxu0 %v3771_v29 }
 0x221   :  { %3776 = vmatprep.subr.bf16.mxu1 %v3775_v42 }
 0x223   :  { %3545 = vmatmul.mubr.msk.f32.vlgmr.msra.gmra.mrb[16].mxu0 %vm371_vm0, %v4485_v2 }
 0x224   :  { %3778 = vmatpush3.bf16.msra.mxu1 %v3775_v42  ;;  %3547 = vmatprep.mubr.msk.f32.mxu0 %vm371_vm0, %v4493_v4  ;;  %v5625_v4 = vld [vmem:[#allocation12_spill] sm:$0xff]  ;;  %v5629_v42 = vld [vmem:[#allocation31_spill] sm:$0xff] }
 0x227   :  { %3529 = vmatmul.mubr.msk.f32.vlgmr.msra.gmra.mrb[8].mxu1 %vm597_vm1, %v4955_v51  ;;  %3548 = vmatmul.mubr.msk.f32.gmra.mrb[18].mxu0 %vm371_vm0, %v4509_v8 }
 0x228   :  { %3531 = vmatprep.mubr.msk.f32.mxu1 %vm597_vm1, %v4960_v21  ;;  %3550 = vmatprep.mubr.msk.f32.mxu0 %vm371_vm0, %v4517_v10 }
 0x22b   :  { %3532 = vmatmul.mubr.msk.f32.gmra.mrb[10].mxu1 %vm597_vm1, %v4973_v7  ;;  %3551 = vmatmul.mubr.msk.f32.gmra.mrb[20].mxu0 %vm371_vm0, %v4529_v12  ;;  %v5626_v12 = vld [vmem:[#allocation7_spill] sm:$0xff] }
 0x22c   :  { %3534 = vmatprep.mubr.msk.f32.mxu1 %vm597_vm1, %v4978_v43  ;;  %3553 = vmatprep.mubr.msk.f32.mxu0 %vm371_vm0, %v4537_v14 }
 0x22f   :  { %3535 = vmatmul.mubr.msk.f32.gmra.mrb[12].mxu1 %vm597_vm1, %v4991_v27  ;;  %3554 = vmatmul.mubr.msk.f32.gmra.mrb[22].mxu0 %vm371_vm0, %v4549_v16 }
 0x230   :  { %3537 = vmatprep.mubr.msk.f32.mxu1 %vm597_vm1, %v4996_v31  ;;  %3580 = vmatprep.mubr.msk.f32.mxu0 %vm371_vm0, %v4480_v1  ;;  %v5627_v1 = vld [vmem:[#allocation24_spill] sm:$0xff] }
 0x233   :  { %3538 = vmatmul.mubr.msk.f32.gmra.mrb[14].mxu1 %vm597_vm1, %v5009_v3 }
 0x234   :  { %3564 = vmatprep.mubr.msk.f32.mxu1 %vm597_vm1, %v4719_v46 }
 0x2f6   :  { %v3546_v2 = vpop.f32.mrb[16].mxu0 }
 0x2f7   :  { %v1195_v8 = vadd.f32 %v3546_v2, %v5625_v4  ;;  %v1155_v10 = vpop.f32.mrb[17].mxu0 }
 0x2f8   :  { %v1194_v14 = vadd.f32 %v1155_v10, %v5626_v12 }
 0x2f9   :  { %v3138_v50 = vmul.f32 -1.442695, %v1195_v8 }
 0x2fa   :  { %v3137_v16 = vmul.f32 -1.442695, %v1194_v14  ;;  %v3530_v20 = vpop.f32.mrb[8].mxu1  ;;  %v3549_v37 = vpop.f32.mrb[18].mxu0 }
 0x2fb   :  { %3959 = vpow2.f32 %v3138_v50  ;;  %v1008_v63 = vadd.f32 %v3530_v20, %v5019_v0  ;;  %v1197_v30 = vadd.f32 %v3549_v37, %v5627_v1  ;;  %v1002_v47 = vpop.f32.mrb[9].mxu1  ;;  %v1165_v48 = vpop.f32.mrb[19].mxu0 }
 0x2fc   :  { %3961 = vpow2.f32 %v3137_v16  ;;  %v1003_v46 = vadd.f32 %v1002_v47, %v5021_v35  ;;  %v1196_v53 = vadd.f32 %v1165_v48, %v5628_v26 }
 0x2fd   :  { %v3124_v36 = vmul.f32 -1.442695, %v1008_v63  ;;  %v3140_v17 = vmul.f32 -1.442695, %v1197_v30 }
 0x2fe   :  { %v3123_v52 = vmul.f32 -1.442695, %v1003_v46  ;;  %v3139_v40 = vmul.f32 -1.442695, %v1196_v53  ;;  %v3533_v33 = vpop.f32.mrb[10].mxu1  ;;  %v3552_v13 = vpop.f32.mrb[20].mxu0 }
 0x2ff   :  { %3963 = vpow2.f32 %v3124_v36  ;;  %v1018_v54 = vadd.f32 %v3533_v33, %v5023_v45  ;;  %v1199_v19 = vadd.f32 %v3552_v13, %v4889_v34  ;;  %v1012_v22 = vpop.f32.mrb[11].mxu1  ;;  %v1175_v11 = vpop.f32.mrb[21].mxu0 }
 0x300   :  { %3965 = vpow2.f32 %v3140_v17  ;;  %v1013_v57 = vadd.f32 %v1012_v22, %v5029_v44  ;;  %v1198_v29 = vadd.f32 %v1175_v11, %v5629_v42 }
 0x301   :  { %3967 = vpow2.f32 %v3123_v52  ;;  %v3126_v2 = vmul.f32 -1.442695, %v1018_v54 }
 0x302   :  { %3969 = vpow2.f32 %v3139_v40  ;;  %v3125_v4 = vmul.f32 -1.442695, %v1013_v57  ;;  %v3536_v8 = vpop.f32.mrb[12].mxu1  ;;  %v3555_v10 = vpop.f32.mrb[22].mxu0 }
 0x303   :  { %3971 = vpow2.f32 %v3126_v2  ;;  %v1028_v12 = vadd.f32 %v3536_v8, %v5031_v15  ;;  %v1201_v14 = vadd.f32 %v3555_v10, %v4917_v41  ;;  %v1022_v50 = vpop.f32.mrb[13].mxu1  ;;  %v1185_v34 = vpop.f32.mrb[23].mxu0 }
 0x304   :  { %3973 = vtanh.f32 %v1199_v19  ;;  %v1200_v16 = vadd.f32 %v1185_v34, %v4903_v62  ;;  %v1023_v48 = vadd.f32 %v1022_v50, %v5039_v55 }
 0x305   :  { %v3960_v20 = vpop.eup %3959  ;;  %3975 = vpow2.f32 %v3125_v4  ;;  %v3142_v1 = vmul.f32 -1.442695, %v1201_v14 }
 0x306   :  { %v3962_v37 = vpop.eup %3961  ;;  %v1209_v63 = vadd.f32 1.0, %v3960_v20  ;;  %3977 = vtanh.f32 %v1198_v29  ;;  %v3539_v30 = vpop.f32.mrb[14].mxu1  ;;  %v3141_v19 = vmul.f32 -1.442695, %v1200_v16 }
 0x307   :  { %v1208_v47 = vadd.f32 1.0, %v3962_v37  ;;  %3979 = vtanh.f32 %v1028_v12  ;;  %v1032_v46 = vpop.f32.mrb[15].mxu1  ;;  %v1038_v17 = vadd.f32 %v3539_v30, %v5042_v5 }
 0x308   :  { %3981 = vrcp.f32 %v1209_v63  ;;  %v1033_v33 = vadd.f32 %v1032_v46, %v5048_v56 }
 0x309   :  { %v3964_v26 = vpop.eup %3963  ;;  %3983 = vrcp.f32 %v1208_v47  ;;  %v3128_v42 = vmul.f32 -1.442695, %v1038_v17 }
 0x30a   :  { %v3966_v41 = vpop.eup %3965  ;;  %v1048_v53 = vadd.f32 1.0, %v3964_v26  ;;  %3985 = vpow2.f32 %v3142_v1  ;;  %v3127_v4 = vmul.f32 -1.442695, %v1033_v33 }
 0x30b   :  { %v3968_v36 = vpop.eup %3967  ;;  %v1221_v62 = vadd.f32 1.0, %v3966_v41  ;;  %3987 = vtanh.f32 %v1023_v48 }
 0x30c   :  { %v3970_v52 = vpop.eup %3969  ;;  %3989 = vrcp.f32 %v1048_v53  ;;  %v1047_v40 = vadd.f32 1.0, %v3968_v36 }
 0x30d   :  { %v3972_v13 = vpop.eup %3971  ;;  %3991 = vrcp.f32 %v1221_v62  ;;  %v1220_v54 = vadd.f32 1.0, %v3970_v52 }
 0x30e   :  { %v3974_v22 = vpop.eup %3973  ;;  %3993 = vrcp.f32 %v1047_v40  ;;  %v1060_v11 = vadd.f32 1.0, %v3972_v13 }
 0x30f   :  { %v3976_v57 = vpop.eup %3975  ;;  %3995 = vrcp.f32 %v1220_v54 }
 0x310   :  { %v3978_v29 = vpop.eup %3977  ;;  %3997 = vrcp.f32 %v1060_v11  ;;  %v1059_v2 = vadd.f32 1.0, %v3976_v57 }
 0x311   :  { %v3980_v8 = vpop.eup %3979  ;;  %3999 = vpow2.f32 %v3141_v19 }
 0x312   :  { %v3982_v10 = vpop.eup %3981  ;;  %4001 = vrcp.f32 %v1059_v2 }
 0x313   :  { %v3984_v12 = vpop.eup %3983  ;;  %v1243_v14 = vmul.f32 %v3982_v10, %v3974_v22  ;;  %4003 = vpow2.f32 %v3128_v42 }
 0x314   :  { %v3986_v50 = vpop.eup %3985  ;;  %v1242_v34 = vmul.f32 %v3984_v12, %v3978_v29  ;;  %4005 = vpow2.f32 %v3127_v4 }
 0x315   :  { %v3988_v16 = vpop.eup %3987  ;;  %v1235_v48 = vadd.f32 1.0, %v3986_v50 }
 0x316   :  { %v3990_v20 = vpop.eup %3989 }
 0x317   :  { %v3992_v37 = vpop.eup %3991  ;;  %v1082_v63 = vmul.f32 %v3990_v20, %v3980_v8  ;;  %v5139_v20 = vld [vmem:[%s5581_s2 + $0x10] sm:$0xff] }
 0x318   :  { %v3994_v1 = vpop.eup %3993  ;;  %v1241_v30 = vmul.f32 %v3992_v37, %v5055_v24  ;;  %v5148_v37 = vld [vmem:[%s5581_s2 + $0x18] sm:$0xff] }
 0x319   :  { %v3996_v47 = vpop.eup %3995  ;;  %v1081_v46 = vmul.f32 %v3994_v1, %v3988_v16  ;;  %v5132_v16 = vld [vmem:[%s5581_s2 + $0x8] sm:$0xff] }
 0x31a   :  { %v3998_v26 = vpop.eup %3997  ;;  %v1240_v41 = vmul.f32 %v3996_v47, %v5061_v39  ;;  %v5115_v53 = vadd.f32 %v1243_v14, %v1241_v30  ;;  %v5166_v1 = vld [vmem:[%s5581_s2 + $0x28] sm:$0xff]  ;;  %v5175_v30 = vld [vmem:[%s5581_s2 + $0x30] sm:$0xff]  ;;  %v5184_v47 = vld [vmem:[%s5581_s2 + $0x38] sm:$0xff] }
 0x31b   :  { %v4000_v36 = vpop.eup %3999  ;;  %v1080_v62 = vmul.f32 %v3998_v26, %v5052_v25 }
 0x31c   :  { %v4002_v17 = vpop.eup %4001  ;;  %4007 = vtanh.f32 %v5115_v53  ;;  %v5119_v52 = vadd.f32 %v1242_v34, %v1240_v41  ;;  %v1234_v40 = vadd.f32 1.0, %v4000_v36  ;;  %v5630_v41 = vld [vmem:[#allocation13_spill] sm:$0xff] }
 0x31d   :  { %v4004_v33 = vpop.eup %4003  ;;  %v1079_v24 = vmul.f32 %v4002_v17, %v5058_v9  ;;  %v5122_v13 = vadd.f32 %v1082_v63, %v1080_v62  ;;  %4009 = vrcp.f32 %v1235_v48  ;;  %v5157_v63 = vld [vmem:[%s5581_s2 + $0x20] sm:$0xff]  ;;  %v5631_v17 = vld [vmem:[#allocation8_spill] sm:$0xff] }
 0x31e   :  { %v4006_v54 = vpop.eup %4005  ;;  %4011 = vtanh.f32 %v5119_v52  ;;  %v1074_v39 = vadd.f32 1.0, %v4004_v33  ;;  %v5193_v48 = vld [vmem:[%s5581_s2] sm:$0xff] }
 0x31f   :  { %4013 = vtanh.f32 %v5122_v13  ;;  %v5126_v19 = vadd.f32 %v1081_v46, %v1079_v24  ;;  %v1073_v25 = vadd.f32 1.0, %v4006_v54  ;;  %v5202_v46 = vld [vmem:[%s5583_s4] sm:$0xff] }
 0x320   :  { %4015 = vrcp.f32 %v1234_v40 }
 0x321   :  { %4017 = vtanh.f32 %v5126_v19 }
 0x322   :  { %4019 = vrcp.f32 %v1074_v39 }
 0x323   :  { %4021 = vrcp.f32 %v1073_v25 }
 0x326   :  { %v4008_v22 = vpop.eup %4007 }
 0x327   :  { %v4010_v11 = vpop.eup %4009 }
 0x328   :  { %v4012_v9 = vpop.eup %4011  ;;  %v1249_v42 = vmul.f32 %v4010_v11, %v4008_v22  ;;  %v5632_v22 = vld [vmem:[#allocation25_spill] sm:$0xff] }
 0x329   :  { %v4014_v57 = vpop.eup %4013 }
 0x32a   :  { %v4016_v29 = vpop.eup %4015 }
 0x32b   :  { %v4018_v2 = vpop.eup %4017  ;;  %v1248_v4 = vmul.f32 %v4016_v29, %v4012_v9  ;;  %v5633_v29 = vld [vmem:[#allocation19_spill] sm:$0xff] }
 0x32c   :  { %v4020_v8 = vpop.eup %4019 }
 0x32d   :  { %v4022_v10 = vpop.eup %4021  ;;  %v3783_v12 = vpack.c.bf16 %v1249_v42, %v1248_v4  ;;  %v1088_v14 = vmul.f32 %v4020_v8, %v4014_v57 }
 0x32e   :  { %v1087_v50 = vmul.f32 %v4022_v10, %v4018_v2 }
 0x32f   :  { %3784 = vmatprep.subr.bf16.mxu1 %v3783_v12  ;;  %3792 = vmatprep.subr.bf16.mxu0 %v3783_v12 }
 0x330   :  { %3786 = vmatpush3.bf16.msra.mxu1 %v3783_v12  ;;  %3794 = vmatpush3.bf16.msra.mxu0 %v3783_v12  ;;  %v3787_v34 = vpack.c.bf16 %v1088_v14, %v1087_v50 }
 0x332   :  { %3788 = vmatprep.subr.bf16.mxu1 %v3787_v34 }
 0x333   :  { %3581 = vmatmul.mubr.msk.f32.vlgmr.msra.gmra.mrb[24].mxu0 %vm371_vm0, %v5132_v16 }
 0x334   :  { %3790 = vmatpush3.bf16.msra.mxu1 %v3787_v34  ;;  %3583 = vmatprep.mubr.msk.f32.mxu0 %vm371_vm0, %v5139_v20 }
 0x337   :  { %3565 = vmatmul.mubr.msk.f32.vlgmr.msra.gmra.mrb[16].mxu1 %vm597_vm1, %v4955_v51  ;;  %3584 = vmatmul.mubr.msk.f32.gmra.mrb[26].mxu0 %vm371_vm0, %v5148_v37 }
 0x338   :  { %3567 = vmatprep.mubr.msk.f32.mxu1 %vm597_vm1, %v4960_v21  ;;  %3586 = vmatprep.mubr.msk.f32.mxu0 %vm371_vm0, %v5157_v63 }
 0x33b   :  { %3568 = vmatmul.mubr.msk.f32.gmra.mrb[18].mxu1 %vm597_vm1, %v4973_v7  ;;  %3587 = vmatmul.mubr.msk.f32.gmra.mrb[28].mxu0 %vm371_vm0, %v5166_v1 }
 0x33c   :  { %3570 = vmatprep.mubr.msk.f32.mxu1 %vm597_vm1, %v4978_v43  ;;  %3589 = vmatprep.mubr.msk.f32.mxu0 %vm371_vm0, %v5175_v30 }
 0x33f   :  { %3571 = vmatmul.mubr.msk.f32.gmra.mrb[20].mxu1 %vm597_vm1, %v4991_v27  ;;  %3590 = vmatmul.mubr.msk.f32.gmra.mrb[30].mxu0 %vm371_vm0, %v5184_v47 }
 0x340   :  { %3573 = vmatprep.mubr.msk.f32.mxu1 %vm597_vm1, %v4996_v31  ;;  %3616 = vmatprep.mubr.msk.f32.mxu0 %vm371_vm0, %v5193_v48 }
 0x343   :  { %3574 = vmatmul.mubr.msk.f32.gmra.mrb[22].mxu1 %vm597_vm1, %v5009_v3 }
 0x344   :  { %3600 = vmatprep.mubr.msk.f32.mxu1 %vm597_vm1, %v5202_v46 }
 0x406   :  { %v3582_v26 = vpop.f32.mrb[24].mxu0 }
 0x407   :  { %v1509_v36 = vadd.f32 %v3582_v26, %v5630_v41  ;;  %v1469_v62 = vpop.f32.mrb[25].mxu0 }
 0x408   :  { %v1508_v40 = vadd.f32 %v1469_v62, %v5631_v17  ;;  %v5634_v17 = vld [vmem:[#allocation32_spill] sm:$0xff] }
 0x409   :  { %v3166_v33 = vmul.f32 -1.442695, %v1509_v36 }
 0x40a   :  { %v3165_v24 = vmul.f32 -1.442695, %v1508_v40  ;;  %v3566_v54 = vpop.f32.mrb[16].mxu1  ;;  %v3585_v39 = vpop.f32.mrb[26].mxu0 }
 0x40b   :  { %4023 = vpow2.f32 %v3166_v33  ;;  %v1322_v25 = vadd.f32 %v3566_v54, %v5019_v0  ;;  %v1511_v11 = vadd.f32 %v3585_v39, %v5632_v22  ;;  %v1316_v9 = vpop.f32.mrb[17].mxu1  ;;  %v1479_v57 = vpop.f32.mrb[27].mxu0 }
 0x40c   :  { %4025 = vpow2.f32 %v3165_v24  ;;  %v1317_v42 = vadd.f32 %v1316_v9, %v5021_v35  ;;  %v1510_v2 = vadd.f32 %v1479_v57, %v5633_v29 }
 0x40d   :  { %v3152_v4 = vmul.f32 -1.442695, %v1322_v25  ;;  %v3168_v8 = vmul.f32 -1.442695, %v1511_v11 }
 0x40e   :  { %v3151_v10 = vmul.f32 -1.442695, %v1317_v42  ;;  %v3167_v12 = vmul.f32 -1.442695, %v1510_v2  ;;  %v3569_v14 = vpop.f32.mrb[18].mxu1  ;;  %v3588_v50 = vpop.f32.mrb[28].mxu0 }
 0x40f   :  { %4027 = vpow2.f32 %v3152_v4  ;;  %v1332_v34 = vadd.f32 %v3569_v14, %v5023_v45  ;;  %v1513_v26 = vadd.f32 %v3588_v50, %v4891_v58  ;;  %v1326_v41 = vpop.f32.mrb[19].mxu1  ;;  %v1489_v36 = vpop.f32.mrb[29].mxu0 }
 0x410   :  { %4029 = vpow2.f32 %v3168_v8  ;;  %v1327_v62 = vadd.f32 %v1326_v41, %v5029_v44  ;;  %v1512_v40 = vadd.f32 %v1489_v36, %v5634_v17 }
 0x411   :  { %4031 = vpow2.f32 %v3151_v10  ;;  %v3154_v33 = vmul.f32 -1.442695, %v1332_v34 }
 0x412   :  { %4033 = vpow2.f32 %v3167_v12  ;;  %v3153_v24 = vmul.f32 -1.442695, %v1327_v62  ;;  %v3572_v54 = vpop.f32.mrb[20].mxu1  ;;  %v3591_v39 = vpop.f32.mrb[30].mxu0 }
 0x413   :  { %4035 = vpow2.f32 %v3154_v33  ;;  %v1342_v25 = vadd.f32 %v3572_v54, %v5031_v15  ;;  %v1515_v22 = vadd.f32 %v3591_v39, %v4919_v49  ;;  %v1336_v11 = vpop.f32.mrb[21].mxu1  ;;  %v1499_v58 = vpop.f32.mrb[31].mxu0 }
 0x414   :  { %4037 = vtanh.f32 %v1513_v26  ;;  %v1514_v9 = vadd.f32 %v1499_v58, %v4905_v23  ;;  %v1337_v10 = vadd.f32 %v1336_v11, %v5039_v55 }
 0x415   :  { %v4024_v57 = vpop.eup %4023  ;;  %4039 = vpow2.f32 %v3153_v24  ;;  %v3170_v2 = vmul.f32 -1.442695, %v1515_v22 }
 0x416   :  { %v4026_v42 = vpop.eup %4025  ;;  %v1523_v29 = vadd.f32 1.0, %v4024_v57  ;;  %4041 = vtanh.f32 %v1512_v40  ;;  %v3575_v4 = vpop.f32.mrb[22].mxu1  ;;  %v3169_v33 = vmul.f32 -1.442695, %v1514_v9 }
 0x417   :  { %v1522_v8 = vadd.f32 1.0, %v4026_v42  ;;  %4043 = vtanh.f32 %v1342_v25  ;;  %v1346_v12 = vpop.f32.mrb[23].mxu1  ;;  %v1352_v26 = vadd.f32 %v3575_v4, %v5042_v5 }
 0x418   :  { %4045 = vrcp.f32 %v1523_v29  ;;  %v1347_v62 = vadd.f32 %v1346_v12, %v5048_v56 }
 0x419   :  { %v4028_v14 = vpop.eup %4027  ;;  %4047 = vrcp.f32 %v1522_v8  ;;  %v3156_v25 = vmul.f32 -1.442695, %v1352_v26 }
 0x41a   :  { %v4030_v49 = vpop.eup %4029  ;;  %v1362_v50 = vadd.f32 1.0, %v4028_v14  ;;  %4049 = vpow2.f32 %v3170_v2  ;;  %v3155_v58 = vmul.f32 -1.442695, %v1347_v62 }
 0x41b   :  { %v4032_v34 = vpop.eup %4031  ;;  %v1535_v23 = vadd.f32 1.0, %v4030_v49  ;;  %4051 = vtanh.f32 %v1337_v10 }
 0x41c   :  { %v4034_v41 = vpop.eup %4033  ;;  %4053 = vrcp.f32 %v1362_v50  ;;  %v1361_v36 = vadd.f32 1.0, %v4032_v34 }
 0x41d   :  { %v4036_v17 = vpop.eup %4035  ;;  %4055 = vrcp.f32 %v1535_v23  ;;  %v1534_v40 = vadd.f32 1.0, %v4034_v41 }
 0x41e   :  { %v4038_v24 = vpop.eup %4037  ;;  %4057 = vrcp.f32 %v1361_v36  ;;  %v1374_v54 = vadd.f32 1.0, %v4036_v17 }
 0x41f   :  { %v4040_v39 = vpop.eup %4039  ;;  %4059 = vrcp.f32 %v1534_v40 }
 0x420   :  { %v4042_v22 = vpop.eup %4041  ;;  %4061 = vrcp.f32 %v1374_v54  ;;  %v1373_v11 = vadd.f32 1.0, %v4040_v39 }
 0x421   :  { %v4044_v57 = vpop.eup %4043  ;;  %4063 = vpow2.f32 %v3169_v33 }
 0x422   :  { %v4046_v42 = vpop.eup %4045  ;;  %4065 = vrcp.f32 %v1373_v11 }
 0x423   :  { %v4048_v29 = vpop.eup %4047  ;;  %v1557_v2 = vmul.f32 %v4046_v42, %v4038_v24  ;;  %4067 = vpow2.f32 %v3156_v25 }
 0x424   :  { %v4050_v4 = vpop.eup %4049  ;;  %v1556_v8 = vmul.f32 %v4048_v29, %v4042_v22  ;;  %4069 = vpow2.f32 %v3155_v58 }
 0x425   :  { %v4052_v9 = vpop.eup %4051  ;;  %v1549_v23 = vadd.f32 1.0, %v4050_v4 }
 0x426   :  { %v4054_v10 = vpop.eup %4053 }
 0x427   :  { %v4056_v12 = vpop.eup %4055  ;;  %v1396_v14 = vmul.f32 %v4054_v10, %v4044_v57 }
 0x428   :  { %v4058_v49 = vpop.eup %4057  ;;  %v1555_v50 = vmul.f32 %v4056_v12, %v5115_v53 }
 0x429   :  { %v4060_v34 = vpop.eup %4059  ;;  %v1395_v26 = vmul.f32 %v4058_v49, %v4052_v9 }
 0x42a   :  { %v4062_v41 = vpop.eup %4061  ;;  %v1554_v36 = vmul.f32 %v4060_v34, %v5119_v52  ;;  %v5224_v62 = vadd.f32 %v1557_v2, %v1555_v50 }
 0x42b   :  { %v4064_v17 = vpop.eup %4063  ;;  %v1394_v40 = vmul.f32 %v4062_v41, %v5122_v13 }
 0x42c   :  { %v4066_v33 = vpop.eup %4065  ;;  %4071 = vtanh.f32 %v5224_v62  ;;  %v5228_v24 = vadd.f32 %v1556_v8, %v1554_v36  ;;  %v1548_v54 = vadd.f32 1.0, %v4064_v17  ;;  %v5637_v17 = vld [vmem:[#allocation26_spill] sm:$0xff] }
 0x42d   :  { %v4068_v39 = vpop.eup %4067  ;;  %v1393_v53 = vmul.f32 %v4066_v33, %v5126_v19  ;;  %v5231_v25 = vadd.f32 %v1396_v14, %v1394_v40  ;;  %4073 = vrcp.f32 %v1549_v23 }
 0x42e   :  { %v4070_v22 = vpop.eup %4069  ;;  %4075 = vtanh.f32 %v5228_v24  ;;  %v1388_v52 = vadd.f32 1.0, %v4068_v39  ;;  %v5638_v39 = vld [vmem:[#allocation20_spill] sm:$0xff] }
 0x42f   :  { %4077 = vtanh.f32 %v5231_v25  ;;  %v5235_v11 = vadd.f32 %v1395_v26, %v1393_v53  ;;  %v1387_v13 = vadd.f32 1.0, %v4070_v22 }
 0x430   :  { %4079 = vrcp.f32 %v1548_v54 }
 0x431   :  { %4081 = vtanh.f32 %v5235_v11 }
 0x432   :  { %4083 = vrcp.f32 %v1388_v52 }
 0x433   :  { %4085 = vrcp.f32 %v1387_v13 }
 0x436   :  { %v4072_v58 = vpop.eup %4071 }
 0x437   :  { %v4074_v57 = vpop.eup %4073 }
 0x438   :  { %v4076_v19 = vpop.eup %4075  ;;  %v1563_v29 = vmul.f32 %v4074_v57, %v4072_v58 }
 0x439   :  { %v4078_v42 = vpop.eup %4077 }
 0x43a   :  { %v4080_v2 = vpop.eup %4079 }
 0x43b   :  { %v4082_v4 = vpop.eup %4081  ;;  %v1562_v8 = vmul.f32 %v4080_v2, %v4076_v19 }
 0x43c   :  { %v4084_v9 = vpop.eup %4083 }
 0x43d   :  { %v4086_v10 = vpop.eup %4085  ;;  %v3795_v12 = vpack.c.bf16 %v1563_v29, %v1562_v8  ;;  %v1402_v14 = vmul.f32 %v4084_v9, %v4078_v42  ;;  %v5639_v9 = vld [vmem:[#allocation33_spill] sm:$0xff] }
 0x43e   :  { %v1401_v49 = vmul.f32 %v4086_v10, %v4082_v4 }
 0x43f   :  { %3796 = vmatprep.subr.bf16.mxu1 %v3795_v12  ;;  %3804 = vmatprep.subr.bf16.mxu0 %v3795_v12 }
 0x440   :  { %3798 = vmatpush3.bf16.msra.mxu1 %v3795_v12  ;;  %3806 = vmatpush3.bf16.msra.mxu0 %v3795_v12  ;;  %v3799_v50 = vpack.c.bf16 %v1402_v14, %v1401_v49 }
 0x442   :  { %3800 = vmatprep.subr.bf16.mxu1 %v3799_v50 }
 0x443   :  { %3617 = vmatmul.mubr.msk.f32.vlgmr.msra.gmra.mrb[32].mxu0 %vm371_vm0, %v5132_v16 }
 0x444   :  { %3802 = vmatpush3.bf16.msra.mxu1 %v3799_v50  ;;  %3619 = vmatprep.mubr.msk.f32.mxu0 %vm371_vm0, %v5139_v20 }
 0x447   :  { %3601 = vmatmul.mubr.msk.f32.vlgmr.msra.gmra.mrb[24].mxu1 %vm597_vm1, %v4955_v51  ;;  %3620 = vmatmul.mubr.msk.f32.gmra.mrb[34].mxu0 %vm371_vm0, %v5148_v37 }
 0x448   :  { %3603 = vmatprep.mubr.msk.f32.mxu1 %vm597_vm1, %v4960_v21  ;;  %3622 = vmatprep.mubr.msk.f32.mxu0 %vm371_vm0, %v5157_v63  ;;  %v5635_v21 = vld [vmem:[#allocation14_spill] sm:$0xff] }
 0x44b   :  { %3604 = vmatmul.mubr.msk.f32.gmra.mrb[26].mxu1 %vm597_vm1, %v4973_v7  ;;  %3623 = vmatmul.mubr.msk.f32.gmra.mrb[36].mxu0 %vm371_vm0, %v5166_v1 }
 0x44c   :  { %3606 = vmatprep.mubr.msk.f32.mxu1 %vm597_vm1, %v4978_v43  ;;  %3625 = vmatprep.mubr.msk.f32.mxu0 %vm371_vm0, %v5175_v30 }
 0x44f   :  { %3607 = vmatmul.mubr.msk.f32.gmra.mrb[28].mxu1 %vm597_vm1, %v4991_v27  ;;  %3626 = vmatmul.mubr.msk.f32.gmra.mrb[38].mxu0 %vm371_vm0, %v5184_v47  ;;  %v5636_v27 = vld [vmem:[#allocation9_spill] sm:$0xff] }
 0x450   :  { %3609 = vmatprep.mubr.msk.f32.mxu1 %vm597_vm1, %v4996_v31  ;;  %3652 = vmatprep.mubr.msk.f32.mxu0 %vm371_vm0, %v5193_v48 }
 0x453   :  { %3610 = vmatmul.mubr.msk.f32.gmra.mrb[30].mxu1 %vm597_vm1, %v5009_v3 }
 0x454   :  { %3636 = vmatprep.mubr.msk.f32.mxu1 %vm597_vm1, %v5202_v46 }
 0x516   :  { %v3618_v51 = vpop.f32.mrb[32].mxu0 }
 0x517   :  { %v1823_v7 = vadd.f32 %v3618_v51, %v5635_v21  ;;  %v1783_v43 = vpop.f32.mrb[33].mxu0 }
 0x518   :  { %v1822_v34 = vadd.f32 %v1783_v43, %v5636_v27 }
 0x519   :  { %v3194_v23 = vmul.f32 -1.442695, %v1823_v7 }
 0x51a   :  { %v3193_v26 = vmul.f32 -1.442695, %v1822_v34  ;;  %v3602_v41 = vpop.f32.mrb[24].mxu1  ;;  %v3621_v36 = vpop.f32.mrb[34].mxu0 }
 0x51b   :  { %4087 = vpow2.f32 %v3194_v23  ;;  %v1636_v31 = vadd.f32 %v3602_v41, %v5019_v0  ;;  %v1825_v40 = vadd.f32 %v3621_v36, %v5637_v17  ;;  %v1630_v33 = vpop.f32.mrb[25].mxu1  ;;  %v1793_v3 = vpop.f32.mrb[35].mxu0 }
 0x51c   :  { %4089 = vpow2.f32 %v3193_v26  ;;  %v1631_v54 = vadd.f32 %v1630_v33, %v5021_v35  ;;  %v1824_v53 = vadd.f32 %v1793_v3, %v5638_v39 }
 0x51d   :  { %v3180_v22 = vmul.f32 -1.442695, %v1636_v31  ;;  %v3196_v52 = vmul.f32 -1.442695, %v1825_v40 }
 0x51e   :  { %v3179_v13 = vmul.f32 -1.442695, %v1631_v54  ;;  %v3195_v58 = vmul.f32 -1.442695, %v1824_v53  ;;  %v3605_v57 = vpop.f32.mrb[26].mxu1  ;;  %v3624_v19 = vpop.f32.mrb[36].mxu0 }
 0x51f   :  { %4091 = vpow2.f32 %v3180_v22  ;;  %v1646_v42 = vadd.f32 %v3605_v57, %v5023_v45  ;;  %v1827_v29 = vadd.f32 %v3624_v19, %v4893_v59  ;;  %v1640_v2 = vpop.f32.mrb[27].mxu1  ;;  %v1803_v4 = vpop.f32.mrb[37].mxu0 }
 0x520   :  { %4093 = vpow2.f32 %v3196_v52  ;;  %v1641_v8 = vadd.f32 %v1640_v2, %v5029_v44  ;;  %v1826_v10 = vadd.f32 %v1803_v4, %v5639_v9 }
 0x521   :  { %4095 = vpow2.f32 %v3179_v13  ;;  %v3182_v12 = vmul.f32 -1.442695, %v1646_v42 }
 0x522   :  { %4097 = vpow2.f32 %v3195_v58  ;;  %v3181_v14 = vmul.f32 -1.442695, %v1641_v8  ;;  %v3608_v49 = vpop.f32.mrb[28].mxu1  ;;  %v3627_v50 = vpop.f32.mrb[38].mxu0 }
 0x523   :  { %4099 = vpow2.f32 %v3182_v12  ;;  %v1656_v51 = vadd.f32 %v3608_v49, %v5031_v15  ;;  %v1829_v21 = vadd.f32 %v3627_v50, %v4921_v6  ;;  %v1650_v7 = vpop.f32.mrb[29].mxu1  ;;  %v1813_v59 = vpop.f32.mrb[39].mxu0 }
 0x524   :  { %4101 = vtanh.f32 %v1827_v29  ;;  %v1828_v43 = vadd.f32 %v1813_v59, %v4907_v32  ;;  %v1651_v31 = vadd.f32 %v1650_v7, %v5039_v55 }
 0x525   :  { %v4088_v27 = vpop.eup %4087  ;;  %4103 = vpow2.f32 %v3181_v14  ;;  %v3198_v26 = vmul.f32 -1.442695, %v1829_v21 }
 0x526   :  { %v4090_v34 = vpop.eup %4089  ;;  %v1837_v23 = vadd.f32 1.0, %v4088_v27  ;;  %4105 = vtanh.f32 %v1826_v10  ;;  %v3611_v41 = vpop.f32.mrb[30].mxu1  ;;  %v3197_v58 = vmul.f32 -1.442695, %v1828_v43 }
 0x527   :  { %v1836_v36 = vadd.f32 1.0, %v4090_v34  ;;  %4107 = vtanh.f32 %v1656_v51  ;;  %v1660_v17 = vpop.f32.mrb[31].mxu1  ;;  %v1666_v54 = vadd.f32 %v3611_v41, %v5042_v5 }
 0x528   :  { %4109 = vrcp.f32 %v1837_v23  ;;  %v1661_v22 = vadd.f32 %v1660_v17, %v5048_v56 }
 0x529   :  { %v4092_v40 = vpop.eup %4091  ;;  %4111 = vrcp.f32 %v1836_v36  ;;  %v3184_v29 = vmul.f32 -1.442695, %v1666_v54 }
 0x52a   :  { %v4094_v6 = vpop.eup %4093  ;;  %v1676_v33 = vadd.f32 1.0, %v4092_v40  ;;  %4113 = vpow2.f32 %v3198_v26  ;;  %v3183_v8 = vmul.f32 -1.442695, %v1661_v22 }
 0x52b   :  { %v4096_v3 = vpop.eup %4095  ;;  %v1849_v32 = vadd.f32 1.0, %v4094_v6  ;;  %4115 = vtanh.f32 %v1651_v31 }
 0x52c   :  { %v4098_v39 = vpop.eup %4097  ;;  %4117 = vrcp.f32 %v1676_v33  ;;  %v1675_v53 = vadd.f32 1.0, %v4096_v3 }
 0x52d   :  { %v4100_v52 = vpop.eup %4099  ;;  %4119 = vrcp.f32 %v1849_v32  ;;  %v1848_v13 = vadd.f32 1.0, %v4098_v39 }
 0x52e   :  { %v4102_v57 = vpop.eup %4101  ;;  %4121 = vrcp.f32 %v1675_v53  ;;  %v1688_v19 = vadd.f32 1.0, %v4100_v52 }
 0x52f   :  { %v4104_v42 = vpop.eup %4103  ;;  %4123 = vrcp.f32 %v1848_v13 }
 0x530   :  { %v4106_v2 = vpop.eup %4105  ;;  %4125 = vrcp.f32 %v1688_v19  ;;  %v1687_v4 = vadd.f32 1.0, %v4104_v42 }
 0x531   :  { %v4108_v9 = vpop.eup %4107  ;;  %4127 = vpow2.f32 %v3197_v58 }
 0x532   :  { %v4110_v10 = vpop.eup %4109  ;;  %4129 = vrcp.f32 %v1687_v4 }
 0x533   :  { %v4112_v12 = vpop.eup %4111  ;;  %v1871_v14 = vmul.f32 %v4110_v10, %v4102_v57  ;;  %4131 = vpow2.f32 %v3184_v29 }
 0x534   :  { %v4114_v49 = vpop.eup %4113  ;;  %v1870_v50 = vmul.f32 %v4112_v12, %v4106_v2  ;;  %4133 = vpow2.f32 %v3183_v8  ;;  %v5309_v12 = vld [vmem:[%s5583_s4 + $0x8] sm:$0xff] }
 0x535   :  { %v4116_v51 = vpop.eup %4115  ;;  %v1863_v23 = vadd.f32 1.0, %v4114_v49  ;;  %v5327_v49 = vld [vmem:[%s5583_s4 + $0x18] sm:$0xff] }
 0x536   :  { %v4118_v21 = vpop.eup %4117 }
 0x537   :  { %v4120_v7 = vpop.eup %4119  ;;  %v1710_v59 = vmul.f32 %v4118_v21, %v4108_v9  ;;  %v5354_v21 = vld [vmem:[%s5583_s4 + $0x30] sm:$0xff] }
 0x538   :  { %v4122_v43 = vpop.eup %4121  ;;  %v1869_v27 = vmul.f32 %v4120_v7, %v5224_v62  ;;  %v5363_v7 = vld [vmem:[%s5583_s4 + $0x38] sm:$0xff] }
 0x539   :  { %v4124_v34 = vpop.eup %4123  ;;  %v1709_v26 = vmul.f32 %v4122_v43, %v4116_v51  ;;  %v5345_v51 = vld [vmem:[%s5583_s4 + $0x28] sm:$0xff] }
 0x53a   :  { %v4126_v41 = vpop.eup %4125  ;;  %v1868_v36 = vmul.f32 %v4124_v34, %v5228_v24  ;;  %v5288_v31 = vadd.f32 %v1871_v14, %v1869_v27  ;;  %v5318_v14 = vld [vmem:[%s5583_s4 + $0x10] sm:$0xff] }
 0x53b   :  { %v4128_v17 = vpop.eup %4127  ;;  %v1708_v40 = vmul.f32 %v4126_v41, %v5231_v25  ;;  %v5640_v43 = vld [vmem:[#allocation15_spill] sm:$0xff] }
 0x53c   :  { %v4130_v6 = vpop.eup %4129  ;;  %4135 = vtanh.f32 %v5288_v31  ;;  %v5292_v33 = vadd.f32 %v1870_v50, %v1868_v36  ;;  %v1862_v3 = vadd.f32 1.0, %v4128_v17  ;;  %v5336_v50 = vld [vmem:[%s5583_s4 + $0x20] sm:$0xff] }
 0x53d   :  { %v4132_v32 = vpop.eup %4131  ;;  %v1707_v62 = vmul.f32 %v4130_v6, %v5235_v11  ;;  %v5295_v54 = vadd.f32 %v1710_v59, %v1708_v40  ;;  %4137 = vrcp.f32 %v1863_v23  ;;  %v5641_v23 = vld [vmem:[#allocation10_spill] sm:$0xff] }
 0x53e   :  { %v4134_v39 = vpop.eup %4133  ;;  %4139 = vtanh.f32 %v5292_v33  ;;  %v1702_v24 = vadd.f32 1.0, %v4132_v32 }
 0x53f   :  { %4141 = vtanh.f32 %v5295_v54  ;;  %v5299_v53 = vadd.f32 %v1709_v26, %v1707_v62  ;;  %v1701_v25 = vadd.f32 1.0, %v4134_v39 }
 0x540   :  { %4143 = vrcp.f32 %v1862_v3  ;;  %v5642_v3 = vld [vmem:[#allocation27_spill] sm:$0xff] }
 0x541   :  { %4145 = vtanh.f32 %v5299_v53 }
 0x542   :  { %4147 = vrcp.f32 %v1702_v24 }
 0x543   :  { %4149 = vrcp.f32 %v1701_v25  ;;  %v5643_v25 = vld [vmem:[#allocation21_spill] sm:$0xff] }
 0x546   :  { %v4136_v22 = vpop.eup %4135 }
 0x547   :  { %v4138_v52 = vpop.eup %4137 }
 0x548   :  { %v4140_v11 = vpop.eup %4139  ;;  %v1877_v58 = vmul.f32 %v4138_v52, %v4136_v22 }
 0x549   :  { %v4142_v13 = vpop.eup %4141 }
 0x54a   :  { %v4144_v57 = vpop.eup %4143 }
 0x54b   :  { %v4146_v19 = vpop.eup %4145  ;;  %v1876_v42 = vmul.f32 %v4144_v57, %v4140_v11 }
 0x54c   :  { %v4148_v29 = vpop.eup %4147 }
 0x54d   :  { %v4150_v2 = vpop.eup %4149  ;;  %v3807_v4 = vpack.c.bf16 %v1877_v58, %v1876_v42  ;;  %v1716_v8 = vmul.f32 %v4148_v29, %v4142_v13 }
 0x54e   :  { %v1715_v9 = vmul.f32 %v4150_v2, %v4146_v19 }
 0x54f   :  { %3808 = vmatprep.subr.bf16.mxu1 %v3807_v4  ;;  %3816 = vmatprep.subr.bf16.mxu0 %v3807_v4 }
 0x550   :  { %3810 = vmatpush3.bf16.msra.mxu1 %v3807_v4  ;;  %3818 = vmatpush3.bf16.msra.mxu0 %v3807_v4  ;;  %v3811_v10 = vpack.c.bf16 %v1716_v8, %v1715_v9 }
 0x552   :  { %3812 = vmatprep.subr.bf16.mxu1 %v3811_v10 }
 0x553   :  { %3653 = vmatmul.mubr.msk.f32.vlgmr.msra.gmra.mrb[40].mxu0 %vm371_vm0, %v5132_v16 }
 0x554   :  { %3814 = vmatpush3.bf16.msra.mxu1 %v3811_v10  ;;  %3655 = vmatprep.mubr.msk.f32.mxu0 %vm371_vm0, %v5139_v20 }
 0x557   :  { %3637 = vmatmul.mubr.msk.f32.vlgmr.msra.gmra.mrb[32].mxu1 %vm597_vm1, %v5309_v12  ;;  %3656 = vmatmul.mubr.msk.f32.gmra.mrb[42].mxu0 %vm371_vm0, %v5148_v37 }
 0x558   :  { %3639 = vmatprep.mubr.msk.f32.mxu1 %vm597_vm1, %v5318_v14  ;;  %3658 = vmatprep.mubr.msk.f32.mxu0 %vm371_vm0, %v5157_v63 }
 0x55b   :  { %3640 = vmatmul.mubr.msk.f32.gmra.mrb[34].mxu1 %vm597_vm1, %v5327_v49  ;;  %3659 = vmatmul.mubr.msk.f32.gmra.mrb[44].mxu0 %vm371_vm0, %v5166_v1 }
 0x55c   :  { %3642 = vmatprep.mubr.msk.f32.mxu1 %vm597_vm1, %v5336_v50  ;;  %3661 = vmatprep.mubr.msk.f32.mxu0 %vm371_vm0, %v5175_v30 }
 0x55f   :  { %3643 = vmatmul.mubr.msk.f32.gmra.mrb[36].mxu1 %vm597_vm1, %v5345_v51  ;;  %3662 = vmatmul.mubr.msk.f32.gmra.mrb[46].mxu0 %vm371_vm0, %v5184_v47 }
 0x560   :  { %3645 = vmatprep.mubr.msk.f32.mxu1 %vm597_vm1, %v5354_v21  ;;  %3688 = vmatprep.mubr.msk.f32.mxu0 %vm371_vm0, %v5193_v48 }
 0x563   :  { %3646 = vmatmul.mubr.msk.f32.gmra.mrb[38].mxu1 %vm597_vm1, %v5363_v7 }
 0x564   :  { %3672 = vmatprep.mubr.msk.f32.mxu1 %vm597_vm1, %v5202_v46 }
 0x626   :  { %v3654_v59 = vpop.f32.mrb[40].mxu0 }
 0x627   :  { %v2137_v27 = vadd.f32 %v3654_v59, %v5640_v43  ;;  %v2097_v34 = vpop.f32.mrb[41].mxu0 }
 0x628   :  { %v2136_v26 = vadd.f32 %v2097_v34, %v5641_v23 }
 0x629   :  { %v3222_v41 = vmul.f32 -1.442695, %v2137_v27 }
 0x62a   :  { %v3221_v36 = vmul.f32 -1.442695, %v2136_v26  ;;  %v3638_v17 = vpop.f32.mrb[32].mxu1  ;;  %v3657_v40 = vpop.f32.mrb[42].mxu0 }
 0x62b   :  { %4151 = vpow2.f32 %v3222_v41  ;;  %v1950_v6 = vadd.f32 %v3638_v17, %v5019_v0  ;;  %v2139_v32 = vadd.f32 %v3657_v40, %v5642_v3  ;;  %v1944_v62 = vpop.f32.mrb[33].mxu1  ;;  %v2107_v39 = vpop.f32.mrb[43].mxu0 }
 0x62c   :  { %4153 = vpow2.f32 %v3221_v36  ;;  %v1945_v24 = vadd.f32 %v1944_v62, %v5021_v35  ;;  %v2138_v22 = vadd.f32 %v2107_v39, %v5643_v25 }
 0x62d   :  { %v3208_v52 = vmul.f32 -1.442695, %v1950_v6  ;;  %v3224_v11 = vmul.f32 -1.442695, %v2139_v32 }
 0x62e   :  { %v3207_v13 = vmul.f32 -1.442695, %v1945_v24  ;;  %v3223_v58 = vmul.f32 -1.442695, %v2138_v22  ;;  %v3641_v57 = vpop.f32.mrb[34].mxu1  ;;  %v3660_v19 = vpop.f32.mrb[44].mxu0 }
 0x62f   :  { %4155 = vpow2.f32 %v3208_v52  ;;  %v1960_v42 = vadd.f32 %v3641_v57, %v5023_v45  ;;  %v2141_v29 = vadd.f32 %v3660_v19, %v4895_v38  ;;  %v1954_v2 = vpop.f32.mrb[35].mxu1  ;;  %v2117_v4 = vpop.f32.mrb[45].mxu0 }
 0x630   :  { %4157 = vpow2.f32 %v3224_v11  ;;  %v1955_v8 = vadd.f32 %v1954_v2, %v5029_v44  ;;  %v2140_v9 = vadd.f32 %v2117_v4, %v4879_v61 }
 0x631   :  { %4159 = vpow2.f32 %v3207_v13  ;;  %v3210_v10 = vmul.f32 -1.442695, %v1960_v42 }
 0x632   :  { %4161 = vpow2.f32 %v3223_v58  ;;  %v3209_v59 = vmul.f32 -1.442695, %v1955_v8  ;;  %v3644_v43 = vpop.f32.mrb[36].mxu1  ;;  %v3663_v27 = vpop.f32.mrb[46].mxu0 }
 0x633   :  { %4163 = vpow2.f32 %v3210_v10  ;;  %v1970_v34 = vadd.f32 %v3644_v43, %v5031_v15  ;;  %v2143_v23 = vadd.f32 %v3663_v27, %v4923_v28  ;;  %v1964_v26 = vpop.f32.mrb[37].mxu1  ;;  %v2127_v38 = vpop.f32.mrb[47].mxu0 }
 0x634   :  { %4165 = vtanh.f32 %v2141_v29  ;;  %v2142_v41 = vadd.f32 %v2127_v38, %v4909_v18  ;;  %v1965_v32 = vadd.f32 %v1964_v26, %v5039_v55 }
 0x635   :  { %v4152_v36 = vpop.eup %4151  ;;  %4167 = vpow2.f32 %v3209_v59  ;;  %v3226_v40 = vmul.f32 -1.442695, %v2143_v23 }
 0x636   :  { %v4154_v17 = vpop.eup %4153  ;;  %v2151_v61 = vadd.f32 1.0, %v4152_v36  ;;  %4169 = vtanh.f32 %v2140_v9  ;;  %v3647_v6 = vpop.f32.mrb[38].mxu1  ;;  %v3225_v19 = vmul.f32 -1.442695, %v2142_v41 }
 0x637   :  { %v2150_v3 = vadd.f32 1.0, %v4154_v17  ;;  %4171 = vtanh.f32 %v1970_v34  ;;  %v1974_v62 = vpop.f32.mrb[39].mxu1  ;;  %v1980_v22 = vadd.f32 %v3647_v6, %v5042_v5 }
 0x638   :  { %4173 = vrcp.f32 %v2151_v61  ;;  %v1975_v13 = vadd.f32 %v1974_v62, %v5048_v56 }
 0x639   :  { %v4156_v39 = vpop.eup %4155  ;;  %4175 = vrcp.f32 %v2150_v3  ;;  %v3212_v4 = vmul.f32 -1.442695, %v1980_v22 }
 0x63a   :  { %v4158_v28 = vpop.eup %4157  ;;  %v1990_v24 = vadd.f32 1.0, %v4156_v39  ;;  %4177 = vpow2.f32 %v3226_v40  ;;  %v3211_v10 = vmul.f32 -1.442695, %v1975_v13 }
 0x63b   :  { %v4160_v25 = vpop.eup %4159  ;;  %v2163_v18 = vadd.f32 1.0, %v4158_v28  ;;  %4179 = vtanh.f32 %v1965_v32 }
 0x63c   :  { %v4162_v52 = vpop.eup %4161  ;;  %4181 = vrcp.f32 %v1990_v24  ;;  %v1989_v11 = vadd.f32 1.0, %v4160_v25 }
 0x63d   :  { %v4164_v58 = vpop.eup %4163  ;;  %4183 = vrcp.f32 %v2163_v18  ;;  %v2162_v57 = vadd.f32 1.0, %v4162_v52 }
 0x63e   :  { %v4166_v42 = vpop.eup %4165  ;;  %4185 = vrcp.f32 %v1989_v11  ;;  %v2002_v29 = vadd.f32 1.0, %v4164_v58 }
 0x63f   :  { %v4168_v2 = vpop.eup %4167  ;;  %4187 = vrcp.f32 %v2162_v57 }
 0x640   :  { %v4170_v8 = vpop.eup %4169  ;;  %4189 = vrcp.f32 %v2002_v29  ;;  %v2001_v9 = vadd.f32 1.0, %v4168_v2 }
 0x641   :  { %v4172_v59 = vpop.eup %4171  ;;  %4191 = vpow2.f32 %v3225_v19 }
 0x642   :  { %v4174_v43 = vpop.eup %4173  ;;  %4193 = vrcp.f32 %v2001_v9 }
 0x643   :  { %v4176_v27 = vpop.eup %4175  ;;  %v2185_v34 = vmul.f32 %v4174_v43, %v4166_v42  ;;  %4195 = vpow2.f32 %v3212_v4 }
 0x644   :  { %v4178_v23 = vpop.eup %4177  ;;  %v2184_v26 = vmul.f32 %v4176_v27, %v4170_v8  ;;  %4197 = vpow2.f32 %v3211_v10 }
 0x645   :  { %v4180_v38 = vpop.eup %4179  ;;  %v2177_v3 = vadd.f32 1.0, %v4178_v23 }
 0x646   :  { %v4182_v41 = vpop.eup %4181 }
 0x647   :  { %v4184_v36 = vpop.eup %4183  ;;  %v2024_v17 = vmul.f32 %v4182_v41, %v4172_v59 }
 0x648   :  { %v4186_v61 = vpop.eup %4185  ;;  %v2183_v40 = vmul.f32 %v4184_v36, %v5288_v31 }
 0x649   :  { %v4188_v6 = vpop.eup %4187  ;;  %v2023_v32 = vmul.f32 %v4186_v61, %v4180_v38 }
 0x64a   :  { %v4190_v62 = vpop.eup %4189  ;;  %v2182_v39 = vmul.f32 %v4188_v6, %v5292_v33  ;;  %v5387_v28 = vadd.f32 %v2185_v34, %v2183_v40  ;;  %v5647_v6 = vld [vmem:[#allocation22_spill] sm:$0xff] }
 0x64b   :  { %v4192_v24 = vpop.eup %4191  ;;  %v2022_v25 = vmul.f32 %v4190_v62, %v5295_v54 }
 0x64c   :  { %v4194_v18 = vpop.eup %4193  ;;  %4199 = vtanh.f32 %v5387_v28  ;;  %v5391_v22 = vadd.f32 %v2184_v26, %v2182_v39  ;;  %v2176_v52 = vadd.f32 1.0, %v4192_v24 }
 0x64d   :  { %v4196_v11 = vpop.eup %4195  ;;  %v2021_v31 = vmul.f32 %v4194_v18, %v5299_v53  ;;  %v5394_v13 = vadd.f32 %v2024_v17, %v2022_v25  ;;  %4201 = vrcp.f32 %v2177_v3 }
 0x64e   :  { %v4198_v58 = vpop.eup %4197  ;;  %4203 = vtanh.f32 %v5391_v22  ;;  %v2016_v33 = vadd.f32 1.0, %v4196_v11 }
 0x64f   :  { %4205 = vtanh.f32 %v5394_v13  ;;  %v5398_v57 = vadd.f32 %v2023_v32, %v2021_v31  ;;  %v2015_v54 = vadd.f32 1.0, %v4198_v58 }
 0x650   :  { %4207 = vrcp.f32 %v2176_v52 }
 0x651   :  { %4209 = vtanh.f32 %v5398_v57 }
 0x652   :  { %4211 = vrcp.f32 %v2016_v33 }
 0x653   :  { %4213 = vrcp.f32 %v2015_v54  ;;  %v5648_v54 = vld [vmem:[#allocation34_spill] sm:$0xff] }
 0x656   :  { %v4200_v19 = vpop.eup %4199 }
 0x657   :  { %v4202_v42 = vpop.eup %4201 }
 0x658   :  { %v4204_v53 = vpop.eup %4203  ;;  %v2191_v2 = vmul.f32 %v4202_v42, %v4200_v19 }
 0x659   :  { %v4206_v29 = vpop.eup %4205 }
 0x65a   :  { %v4208_v4 = vpop.eup %4207 }
 0x65b   :  { %v4210_v8 = vpop.eup %4209  ;;  %v2190_v9 = vmul.f32 %v4208_v4, %v4204_v53 }
 0x65c   :  { %v4212_v10 = vpop.eup %4211 }
 0x65d   :  { %v4214_v59 = vpop.eup %4213  ;;  %v3819_v43 = vpack.c.bf16 %v2191_v2, %v2190_v9  ;;  %v2030_v27 = vmul.f32 %v4212_v10, %v4206_v29 }
 0x65e   :  { %v2029_v34 = vmul.f32 %v4214_v59, %v4210_v8  ;;  %v5649_v8 = vld [vmem:[#allocation38_spill] sm:$0xff]  ;;  %v5650_v59 = vld [vmem:[#allocation37_spill] sm:$0xff] }
 0x65f   :  { %3820 = vmatprep.subr.bf16.mxu1 %v3819_v43  ;;  %3828 = vmatprep.subr.bf16.mxu0 %v3819_v43 }
 0x660   :  { %3822 = vmatpush3.bf16.msra.mxu1 %v3819_v43  ;;  %3830 = vmatpush3.bf16.msra.mxu0 %v3819_v43  ;;  %v3823_v23 = vpack.c.bf16 %v2030_v27, %v2029_v34 }
 0x662   :  { %3824 = vmatprep.subr.bf16.mxu1 %v3823_v23 }
 0x663   :  { %3689 = vmatmul.mubr.msk.f32.vlgmr.msra.gmra.mrb[48].mxu0 %vm371_vm0, %v5132_v16 }
 0x664   :  { %3826 = vmatpush3.bf16.msra.mxu1 %v3823_v23  ;;  %3691 = vmatprep.mubr.msk.f32.mxu0 %vm371_vm0, %v5139_v20  ;;  %v5644_v20 = vld [vmem:[#allocation16_spill] sm:$0xff] }
 0x667   :  { %3673 = vmatmul.mubr.msk.f32.vlgmr.msra.gmra.mrb[40].mxu1 %vm597_vm1, %v5309_v12  ;;  %3692 = vmatmul.mubr.msk.f32.gmra.mrb[50].mxu0 %vm371_vm0, %v5148_v37 }
 0x668   :  { %3675 = vmatprep.mubr.msk.f32.mxu1 %vm597_vm1, %v5318_v14  ;;  %3694 = vmatprep.mubr.msk.f32.mxu0 %vm371_vm0, %v5157_v63 }
 0x66b   :  { %3676 = vmatmul.mubr.msk.f32.gmra.mrb[42].mxu1 %vm597_vm1, %v5327_v49  ;;  %3695 = vmatmul.mubr.msk.f32.gmra.mrb[52].mxu0 %vm371_vm0, %v5166_v1  ;;  %v5645_v1 = vld [vmem:[#allocation11_spill] sm:$0xff] }
 0x66c   :  { %3678 = vmatprep.mubr.msk.f32.mxu1 %vm597_vm1, %v5336_v50  ;;  %3697 = vmatprep.mubr.msk.f32.mxu0 %vm371_vm0, %v5175_v30 }
 0x66f   :  { %3679 = vmatmul.mubr.msk.f32.gmra.mrb[44].mxu1 %vm597_vm1, %v5345_v51  ;;  %3698 = vmatmul.mubr.msk.f32.gmra.mrb[54].mxu0 %vm371_vm0, %v5184_v47 }
 0x670   :  { %3681 = vmatprep.mubr.msk.f32.mxu1 %vm597_vm1, %v5354_v21  ;;  %3724 = vmatprep.mubr.msk.f32.mxu0 %vm371_vm0, %v5193_v48  ;;  %v5646_v48 = vld [vmem:[#allocation28_spill] sm:$0xff] }
 0x673   :  { %3682 = vmatmul.mubr.msk.f32.gmra.mrb[46].mxu1 %vm597_vm1, %v5363_v7 }
 0x674   :  { %3708 = vmatprep.mubr.msk.f32.mxu1 %vm597_vm1, %v5202_v46 }
 0x736   :  { %v3690_v16 = vpop.f32.mrb[48].mxu0 }
 0x737   :  { %v2451_v37 = vadd.f32 %v3690_v16, %v5644_v20  ;;  %v2411_v63 = vpop.f32.mrb[49].mxu0 }
 0x738   :  { %v2450_v30 = vadd.f32 %v2411_v63, %v5645_v1 }
 0x739   :  { %v3250_v26 = vmul.f32 -1.442695, %v2451_v37 }
 0x73a   :  { %v3249_v47 = vmul.f32 -1.442695, %v2450_v30  ;;  %v3674_v38 = vpop.f32.mrb[40].mxu1  ;;  %v3693_v41 = vpop.f32.mrb[50].mxu0 }
 0x73b   :  { %4215 = vpow2.f32 %v3250_v26  ;;  %v2264_v36 = vadd.f32 %v3674_v38, %v5019_v0  ;;  %v2453_v17 = vadd.f32 %v3693_v41, %v5646_v48  ;;  %v2258_v61 = vpop.f32.mrb[41].mxu1  ;;  %v2421_v40 = vpop.f32.mrb[51].mxu0 }
 0x73c   :  { %4217 = vpow2.f32 %v3249_v47  ;;  %v2259_v46 = vadd.f32 %v2258_v61, %v5021_v35  ;;  %v2452_v3 = vadd.f32 %v2421_v40, %v5647_v6 }
 0x73d   :  { %v3236_v32 = vmul.f32 -1.442695, %v2264_v36  ;;  %v3252_v62 = vmul.f32 -1.442695, %v2453_v17 }
 0x73e   :  { %v3235_v39 = vmul.f32 -1.442695, %v2259_v46  ;;  %v3251_v24 = vmul.f32 -1.442695, %v2452_v3  ;;  %v3677_v25 = vpop.f32.mrb[42].mxu1  ;;  %v3696_v18 = vpop.f32.mrb[52].mxu0 }
 0x73f   :  { %4219 = vpow2.f32 %v3236_v32  ;;  %v2274_v52 = vadd.f32 %v3677_v25, %v5023_v45  ;;  %v2455_v11 = vadd.f32 %v3696_v18, %v4897_v60  ;;  %v2268_v31 = vpop.f32.mrb[43].mxu1  ;;  %v2431_v58 = vpop.f32.mrb[53].mxu0 }
 0x740   :  { %4221 = vpow2.f32 %v3252_v62  ;;  %v2269_v33 = vadd.f32 %v2268_v31, %v5029_v44  ;;  %v2454_v19 = vadd.f32 %v2431_v58, %v5648_v54 }
 0x741   :  { %4223 = vpow2.f32 %v3235_v39  ;;  %v3238_v42 = vmul.f32 -1.442695, %v2274_v52 }
 0x742   :  { %4225 = vpow2.f32 %v3251_v24  ;;  %v3237_v53 = vmul.f32 -1.442695, %v2269_v33  ;;  %v3680_v29 = vpop.f32.mrb[44].mxu1  ;;  %v3699_v2 = vpop.f32.mrb[54].mxu0 }
 0x743   :  { %4227 = vpow2.f32 %v3238_v42  ;;  %v2284_v4 = vadd.f32 %v3680_v29, %v5031_v15  ;;  %v2457_v9 = vadd.f32 %v3699_v2, %v5649_v8  ;;  %v2278_v10 = vpop.f32.mrb[45].mxu1  ;;  %v2441_v60 = vpop.f32.mrb[55].mxu0 }
 0x744   :  { %4229 = vtanh.f32 %v2455_v11  ;;  %v2456_v43 = vadd.f32 %v2441_v60, %v5650_v59  ;;  %v2279_v63 = vadd.f32 %v2278_v10, %v5039_v55 }
 0x745   :  { %v4216_v27 = vpop.eup %4215  ;;  %4231 = vpow2.f32 %v3237_v53  ;;  %v3254_v16 = vmul.f32 -1.442695, %v2457_v9 }
 0x746   :  { %v4218_v34 = vpop.eup %4217  ;;  %v2465_v23 = vadd.f32 1.0, %v4216_v27  ;;  %4233 = vtanh.f32 %v2454_v19  ;;  %v3683_v20 = vpop.f32.mrb[46].mxu1  ;;  %v3253_v6 = vmul.f32 -1.442695, %v2456_v43 }
 0x747   :  { %v2464_v37 = vadd.f32 1.0, %v4218_v34  ;;  %4235 = vtanh.f32 %v2284_v4  ;;  %v2288_v1 = vpop.f32.mrb[47].mxu1  ;;  %v2294_v36 = vadd.f32 %v3683_v20, %v5042_v5 }
 0x748   :  { %4237 = vrcp.f32 %v2465_v23  ;;  %v2289_v61 = vadd.f32 %v2288_v1, %v5048_v56 }
 0x749   :  { %v4220_v30 = vpop.eup %4219  ;;  %4239 = vrcp.f32 %v2464_v37  ;;  %v3240_v39 = vmul.f32 -1.442695, %v2294_v36 }
 0x74a   :  { %v4222_v26 = vpop.eup %4221  ;;  %v2304_v47 = vadd.f32 1.0, %v4220_v30  ;;  %4241 = vpow2.f32 %v3254_v16  ;;  %v3239_v18 = vmul.f32 -1.442695, %v2289_v61 }
 0x74b   :  { %v4224_v38 = vpop.eup %4223  ;;  %v2477_v41 = vadd.f32 1.0, %v4222_v26  ;;  %4243 = vtanh.f32 %v2279_v63 }
 0x74c   :  { %v4226_v48 = vpop.eup %4225  ;;  %4245 = vrcp.f32 %v2304_v47  ;;  %v2303_v17 = vadd.f32 1.0, %v4224_v38 }
 0x74d   :  { %v4228_v40 = vpop.eup %4227  ;;  %4247 = vrcp.f32 %v2477_v41  ;;  %v2476_v46 = vadd.f32 1.0, %v4226_v48 }
 0x74e   :  { %v4230_v3 = vpop.eup %4229  ;;  %4249 = vrcp.f32 %v2303_v17  ;;  %v2316_v32 = vadd.f32 1.0, %v4228_v40 }
 0x74f   :  { %v4232_v62 = vpop.eup %4231  ;;  %4251 = vrcp.f32 %v2476_v46 }
 0x750   :  { %v4234_v24 = vpop.eup %4233  ;;  %4253 = vrcp.f32 %v2316_v32  ;;  %v2315_v25 = vadd.f32 1.0, %v4232_v62  ;;  %v4391_v62 = vld [vmem:[%s5581_s2 + $0x8] sm:$0xff] }
 0x751   :  { %v4236_v52 = vpop.eup %4235  ;;  %4255 = vpow2.f32 %v3253_v6 }
 0x752   :  { %v4238_v11 = vpop.eup %4237  ;;  %4257 = vrcp.f32 %v2315_v25  ;;  %v4394_v25 = vld [vmem:[%s5581_s2 + $0x20] sm:$0xff] }
 0x753   :  { %v4240_v31 = vpop.eup %4239  ;;  %v2499_v58 = vmul.f32 %v4238_v11, %v4230_v3  ;;  %4259 = vpow2.f32 %v3240_v39  ;;  %v4392_v39 = vld [vmem:[%s5581_s2 + $0x10] sm:$0xff]  ;;  %v4397_v11 = vld [vmem:[%s5581_s2 + $0x38] sm:$0xff] }
 0x754   :  { %v4242_v33 = vpop.eup %4241  ;;  %v2498_v54 = vmul.f32 %v4240_v31, %v4234_v24  ;;  %4261 = vpow2.f32 %v3239_v18  ;;  %v4393_v24 = vld [vmem:[%s5581_s2 + $0x18] sm:$0xff]  ;;  %v4395_v18 = vld [vmem:[%s5581_s2 + $0x28] sm:$0xff]  ;;  %v4398_v31 = vld [vmem:[%s5583_s4] sm:$0xff] }
 0x755   :  { %v4244_v19 = vpop.eup %4243  ;;  %v2491_v9 = vadd.f32 1.0, %v4242_v33  ;;  %v5651_v33 = vld [vmem:[#allocation17_spill] sm:$0xff] }
 0x756   :  { %v4246_v42 = vpop.eup %4245 }
 0x757   :  { %v4248_v53 = vpop.eup %4247  ;;  %v2338_v29 = vmul.f32 %v4246_v42, %v4236_v52  ;;  %v4396_v52 = vld [vmem:[%s5581_s2 + $0x30] sm:$0xff] }
 0x758   :  { %v4250_v2 = vpop.eup %4249  ;;  %v2497_v4 = vmul.f32 %v4248_v53, %v5387_v28  ;;  %v5652_v42 = vld [vmem:[#allocation23_spill] sm:$0xff] }
 0x759   :  { %v4252_v8 = vpop.eup %4251  ;;  %v2337_v10 = vmul.f32 %v4250_v2, %v4244_v19 }
 0x75a   :  { %v4254_v60 = vpop.eup %4253  ;;  %v2496_v59 = vmul.f32 %v4252_v8, %v5391_v22  ;;  %v5451_v43 = vadd.f32 %v2499_v58, %v2497_v4 }
 0x75b   :  { %v4256_v27 = vpop.eup %4255  ;;  %v2336_v34 = vmul.f32 %v4254_v60, %v5394_v13 }
 0x75c   :  { %v4258_v23 = vpop.eup %4257  ;;  %4263 = vtanh.f32 %v5451_v43  ;;  %v5455_v16 = vadd.f32 %v2498_v54, %v2496_v59  ;;  %v2490_v20 = vadd.f32 1.0, %v4256_v27 }
 0x75d   :  { %v4260_v37 = vpop.eup %4259  ;;  %v2335_v28 = vmul.f32 %v4258_v23, %v5398_v57  ;;  %v5458_v63 = vadd.f32 %v2338_v29, %v2336_v34  ;;  %4265 = vrcp.f32 %v2491_v9  ;;  %v5654_v23 = vld [vmem:[#allocation30_spill] sm:$0xff] }
 0x75e   :  { %v4262_v1 = vpop.eup %4261  ;;  %4267 = vtanh.f32 %v5455_v16  ;;  %v2330_v22 = vadd.f32 1.0, %v4260_v37 }
 0x75f   :  { %4269 = vtanh.f32 %v5458_v63  ;;  %v5462_v30 = vadd.f32 %v2337_v10, %v2335_v28  ;;  %v2329_v13 = vadd.f32 1.0, %v4262_v1  ;;  %v5653_v10 = vld [vmem:[#allocation29_spill] sm:$0xff] }
 0x760   :  { %4271 = vrcp.f32 %v2490_v20 }
 0x761   :  { %4273 = vtanh.f32 %v5462_v30 }
 0x762   :  { %4275 = vrcp.f32 %v2330_v22 }
 0x763   :  { %4277 = vrcp.f32 %v2329_v13 }
 0x766   :  { %v4264_v26 = vpop.eup %4263 }
 0x767   :  { %v4266_v47 = vpop.eup %4265 }
 0x768   :  { %v4268_v57 = vpop.eup %4267  ;;  %v2505_v41 = vmul.f32 %v4266_v47, %v4264_v26 }
 0x769   :  { %v4270_v38 = vpop.eup %4269 }
 0x76a   :  { %v4272_v36 = vpop.eup %4271 }
 0x76b   :  { %v4274_v48 = vpop.eup %4273  ;;  %v2504_v17 = vmul.f32 %v4272_v36, %v4268_v57  ;;  %v5655_v57 = vld [vmem:[#allocation36_spill] sm:$0xff] }
 0x76c   :  { %v4276_v61 = vpop.eup %4275 }
 0x76d   :  { %v4278_v40 = vpop.eup %4277  ;;  %v3831_v46 = vpack.c.bf16 %v2505_v41, %v2504_v17  ;;  %v2344_v6 = vmul.f32 %v4276_v61, %v4270_v38  ;;  %v5656_v17 = vld [vmem:[#allocation35_spill] sm:$0xff] }
 0x76e   :  { %v2343_v3 = vmul.f32 %v4278_v40, %v4274_v48 }
 0x76f   :  { %3832 = vmatprep.subr.bf16.mxu1 %v3831_v46  ;;  %3840 = vmatprep.subr.bf16.mxu0 %v3831_v46 }
 0x770   :  { %3834 = vmatpush3.bf16.msra.mxu1 %v3831_v46  ;;  %3842 = vmatpush3.bf16.msra.mxu0 %v3831_v46  ;;  %v3835_v32 = vpack.c.bf16 %v2344_v6, %v2343_v3 }
 0x772   :  { %3836 = vmatprep.subr.bf16.mxu1 %v3835_v32 }
 0x773   :  { %3725 = vmatmul.mubr.msk.f32.vlgmr.msra.gmra.mrb[56].mxu0 %vm371_vm0, %v4391_v62  ;;  %v5657_v62 = vld [vmem:[#allocation39_spill] sm:$0xff] }
 0x774   :  { %3838 = vmatpush3.bf16.msra.mxu1 %v3835_v32  ;;  %3727 = vmatprep.mubr.msk.f32.mxu0 %vm371_vm0, %v4392_v39 }
 0x777   :  { %3709 = vmatmul.mubr.msk.f32.vlgmr.msra.gmra.mrb[48].mxu1 %vm597_vm1, %v5309_v12  ;;  %3728 = vmatmul.mubr.msk.f32.gmra.mrb[58].mxu0 %vm371_vm0, %v4393_v24 }
 0x778   :  { %3711 = vmatprep.mubr.msk.f32.mxu1 %vm597_vm1, %v5318_v14  ;;  %3730 = vmatprep.mubr.msk.f32.mxu0 %vm371_vm0, %v4394_v25 }
 0x77b   :  { %3712 = vmatmul.mubr.msk.f32.gmra.mrb[50].mxu1 %vm597_vm1, %v5327_v49  ;;  %3731 = vmatmul.mubr.msk.f32.gmra.mrb[60].mxu0 %vm371_vm0, %v4395_v18  ;;  %v5658_v18 = vld [vmem:[#allocation40_spill] sm:$0xff] }
 0x77c   :  { %3714 = vmatprep.mubr.msk.f32.mxu1 %vm597_vm1, %v5336_v50  ;;  %3733 = vmatprep.mubr.msk.f32.mxu0 %vm371_vm0, %v4396_v52 }
 0x77f   :  { %3715 = vmatmul.mubr.msk.f32.gmra.mrb[52].mxu1 %vm597_vm1, %v5345_v51  ;;  %3734 = vmatmul.mubr.msk.f32.gmra.mrb[62].mxu0 %vm371_vm0, %v4397_v11 }
 0x780   :  { %3717 = vmatprep.mubr.msk.f32.mxu1 %vm597_vm1, %v5354_v21 }
 0x783   :  { %3718 = vmatmul.mubr.msk.f32.gmra.mrb[54].mxu1 %vm597_vm1, %v5363_v7 }
 0x784   :  { %3744 = vmatprep.mubr.msk.f32.mxu1 %vm597_vm1, %v4398_v31 }
 0x846   :  { %v3726_v58 = vpop.f32.mrb[56].mxu0 }
 0x847   :  { %v2765_v54 = vadd.f32 %v3726_v58, %v5651_v33  ;;  %v2725_v19 = vpop.f32.mrb[57].mxu0 }
 0x848   :  { %v2764_v53 = vadd.f32 %v2725_v19, %v5652_v42 }
 0x849   :  { %v3278_v29 = vmul.f32 -1.442695, %v2765_v54 }
 0x84a   :  { %v3277_v2 = vmul.f32 -1.442695, %v2764_v53  ;;  %v3710_v4 = vpop.f32.mrb[48].mxu1  ;;  %v3729_v8 = vpop.f32.mrb[58].mxu0 }
 0x84b   :  { %4279 = vpow2.f32 %v3278_v29  ;;  %v2578_v9 = vadd.f32 %v3710_v4, %v5019_v0  ;;  %v2767_v60 = vadd.f32 %v3729_v8, %v5653_v10  ;;  %v2572_v59 = vpop.f32.mrb[49].mxu1  ;;  %v2735_v27 = vpop.f32.mrb[59].mxu0 }
 0x84c   :  { %4281 = vpow2.f32 %v3277_v2  ;;  %v2573_v34 = vadd.f32 %v2572_v59, %v5021_v35  ;;  %v2766_v20 = vadd.f32 %v2735_v27, %v5654_v23 }
 0x84d   :  { %v3264_v37 = vmul.f32 -1.442695, %v2578_v9  ;;  %v3280_v28 = vmul.f32 -1.442695, %v2767_v60 }
 0x84e   :  { %v3263_v1 = vmul.f32 -1.442695, %v2573_v34  ;;  %v3279_v22 = vmul.f32 -1.442695, %v2766_v20  ;;  %v3713_v13 = vpop.f32.mrb[50].mxu1  ;;  %v3732_v26 = vpop.f32.mrb[60].mxu0 }
 0x84f   :  { %4283 = vpow2.f32 %v3264_v37  ;;  %v2588_v47 = vadd.f32 %v3713_v13, %v5023_v45  ;;  %v2769_v38 = vadd.f32 %v3732_v26, %v5655_v57  ;;  %v2582_v41 = vpop.f32.mrb[51].mxu1  ;;  %v2745_v36 = vpop.f32.mrb[61].mxu0 }
 0x850   :  { %4285 = vpow2.f32 %v3280_v28  ;;  %v2583_v48 = vadd.f32 %v2582_v41, %v5029_v44  ;;  %v2768_v61 = vadd.f32 %v2745_v36, %v5656_v17 }
 0x851   :  { %4287 = vpow2.f32 %v3263_v1  ;;  %v3266_v40 = vmul.f32 -1.442695, %v2588_v47 }
 0x852   :  { %4289 = vpow2.f32 %v3279_v22  ;;  %v3265_v46 = vmul.f32 -1.442695, %v2583_v48  ;;  %v3716_v6 = vpop.f32.mrb[52].mxu1  ;;  %v3735_v3 = vpop.f32.mrb[62].mxu0 }
 0x853   :  { %4291 = vpow2.f32 %v3266_v40  ;;  %v2598_v32 = vadd.f32 %v3716_v6, %v5031_v15  ;;  %v2771_v39 = vadd.f32 %v3735_v3, %v5657_v62  ;;  %v2592_v24 = vpop.f32.mrb[53].mxu1  ;;  %v2755_v25 = vpop.f32.mrb[63].mxu0 }
 0x854   :  { %4293 = vtanh.f32 %v2769_v38  ;;  %v2770_v52 = vadd.f32 %v2755_v25, %v5658_v18  ;;  %v2593_v42 = vadd.f32 %v2592_v24, %v5039_v55 }
 0x855   :  { %v4280_v11 = vpop.eup %4279  ;;  %4295 = vpow2.f32 %v3265_v46  ;;  %v3282_v33 = vmul.f32 -1.442695, %v2771_v39 }
 0x856   :  { %v4282_v31 = vpop.eup %4281  ;;  %v2779_v58 = vadd.f32 1.0, %v4280_v11  ;;  %4297 = vtanh.f32 %v2768_v61  ;;  %v3719_v54 = vpop.f32.mrb[54].mxu1  ;;  %v3281_v20 = vmul.f32 -1.442695, %v2770_v52 }
 0x857   :  { %v2778_v19 = vadd.f32 1.0, %v4282_v31  ;;  %4299 = vtanh.f32 %v2598_v32  ;;  %v2602_v53 = vpop.f32.mrb[55].mxu1  ;;  %v2608_v10 = vadd.f32 %v3719_v54, %v5042_v5 }
 0x858   :  { %4301 = vrcp.f32 %v2779_v58  ;;  %v2603_v27 = vadd.f32 %v2602_v53, %v5048_v56 }
 0x859   :  { %v4284_v29 = vpop.eup %4283  ;;  %4303 = vrcp.f32 %v2778_v19  ;;  %v3268_v22 = vmul.f32 -1.442695, %v2608_v10 }
 0x85a   :  { %v4286_v2 = vpop.eup %4285  ;;  %v2618_v4 = vadd.f32 1.0, %v4284_v29  ;;  %4305 = vpow2.f32 %v3282_v33  ;;  %v3267_v47 = vmul.f32 -1.442695, %v2603_v27 }
 0x85b   :  { %v4288_v8 = vpop.eup %4287  ;;  %v2791_v9 = vadd.f32 1.0, %v4286_v2  ;;  %4307 = vtanh.f32 %v2593_v42 }
 0x85c   :  { %v4290_v60 = vpop.eup %4289  ;;  %4309 = vrcp.f32 %v2618_v4  ;;  %v2617_v59 = vadd.f32 1.0, %v4288_v8 }
 0x85d   :  { %v4292_v34 = vpop.eup %4291  ;;  %4311 = vrcp.f32 %v2791_v9  ;;  %v2790_v23 = vadd.f32 1.0, %v4290_v60 }
 0x85e   :  { %v4294_v37 = vpop.eup %4293  ;;  %4313 = vrcp.f32 %v2617_v59  ;;  %v2630_v28 = vadd.f32 1.0, %v4292_v34 }
 0x85f   :  { %v4296_v1 = vpop.eup %4295  ;;  %4315 = vrcp.f32 %v2790_v23 }
 0x860   :  { %v4298_v13 = vpop.eup %4297  ;;  %4317 = vrcp.f32 %v2630_v28  ;;  %v2629_v26 = vadd.f32 1.0, %v4296_v1  ;;  %v4426_v1 = vmov 0.0|0.0  }
 0x861   :  { %v4300_v57 = vpop.eup %4299  ;;  %4319 = vpow2.f32 %v3281_v20  ;;  %3851 = vmatprep.subr.bf16.mxu0 %v4426_v1 }
 0x862   :  { %v4302_v38 = vpop.eup %4301  ;;  %4321 = vrcp.f32 %v2629_v26 }
 0x863   :  { %v4304_v41 = vpop.eup %4303  ;;  %v2813_v36 = vmul.f32 %v4302_v38, %v4294_v37  ;;  %4323 = vpow2.f32 %v3268_v22 }
 0x864   :  { %v4306_v48 = vpop.eup %4305  ;;  %v2812_v17 = vmul.f32 %v4304_v41, %v4298_v13  ;;  %4325 = vpow2.f32 %v3267_v47 }
 0x865   :  { %v4308_v61 = vpop.eup %4307  ;;  %v2805_v3 = vadd.f32 1.0, %v4306_v48 }
 0x866   :  { %v4310_v40 = vpop.eup %4309 }
 0x867   :  { %v4312_v46 = vpop.eup %4311  ;;  %v2652_v6 = vmul.f32 %v4310_v40, %v4300_v57  ;;  %4327 = vrcp.f32 %v2805_v3 }
 0x868   :  { %v4314_v32 = vpop.eup %4313  ;;  %v2811_v62 = vmul.f32 %v4312_v46, %v5451_v43 }
 0x869   :  { %v4316_v39 = vpop.eup %4315  ;;  %v2651_v24 = vmul.f32 %v4314_v32, %v4308_v61 }
 0x86a   :  { %v4318_v25 = vpop.eup %4317  ;;  %v2810_v18 = vmul.f32 %v4316_v39, %v5455_v16  ;;  %v2815_v52 = vadd.f32 %v2813_v36, %v2811_v62 }
 0x86b   :  { %v4320_v11 = vpop.eup %4319  ;;  %v2650_v31 = vmul.f32 %v4318_v25, %v5458_v63 }
 0x86c   :  { %v4322_v58 = vpop.eup %4321  ;;  %4329 = vtanh.f32 %v2815_v52  ;;  %v2814_v33 = vadd.f32 %v2812_v17, %v2810_v18  ;;  %v2804_v54 = vadd.f32 1.0, %v4320_v11 }
 0x86d   :  { %v4324_v19 = vpop.eup %4323  ;;  %v2649_v42 = vmul.f32 %v4322_v58, %v5462_v30  ;;  %v5531_v53 = vadd.f32 %v2652_v6, %v2650_v31 }
 0x86e   :  { %v4326_v43 = vpop.eup %4325  ;;  %4331 = vtanh.f32 %v2814_v33  ;;  %v2644_v29 = vadd.f32 1.0, %v4324_v19 }
 0x86f   :  { %4333 = vtanh.f32 %v5531_v53  ;;  %v5534_v16 = vadd.f32 %v2651_v24, %v2649_v42  ;;  %v2643_v2 = vadd.f32 1.0, %v4326_v43 }
 0x870   :  { %4335 = vrcp.f32 %v2804_v54 }
 0x871   :  { %4337 = vtanh.f32 %v5534_v16  ;;  %v4328_v63 = vpop.eup %4327 }
 0x872   :  { %4339 = vrcp.f32 %v2644_v29 }
 0x873   :  { %4341 = vrcp.f32 %v2643_v2 }
 0x876   :  { %v4330_v4 = vpop.eup %4329 }
 0x877   :  { %v2819_v8 = vmul.f32 %v4330_v4, %v4328_v63 }
 0x878   :  { %v4332_v9 = vpop.eup %4331 }
 0x879   :  { %v4334_v30 = vpop.eup %4333 }
 0x87a   :  { %v4336_v10 = vpop.eup %4335 }
 0x87b   :  { %v4338_v60 = vpop.eup %4337  ;;  %v2818_v59 = vmul.f32 %v4336_v10, %v4332_v9 }
 0x87c   :  { %v4340_v27 = vpop.eup %4339 }
 0x87d   :  { %v4342_v34 = vpop.eup %4341  ;;  %v3843_v23 = vpack.c.bf16 %v2819_v8, %v2818_v59  ;;  %v2658_v20 = vmul.f32 %v4340_v27, %v4334_v30  ;;  %v5660_v59 = vld [vmem:[#allocation6_spill] sm:$0xff] }
 0x87e   :  { %v2657_v37 = vmul.f32 %v4342_v34, %v4338_v60 }
 0x87f   :  { %3844 = vmatprep.subr.bf16.mxu1 %v3843_v23 }
 0x880   :  { %3846 = vmatpush3.bf16.msra.mxu1 %v3843_v23  ;;  %v3847_v28 = vpack.c.bf16 %v2658_v20, %v2657_v37 }
 0x882   :  { %3848 = vmatprep.subr.bf16.mxu1 %v3847_v28 }
 0x884   :  { %3850 = vmatpush3.bf16.msra.mxu1 %v3847_v28 }
 0x887   :  { %3745 = vmatmul.mubr.msk.f32.vlgmr.msra.gmra.mrb[56].mxu1 %vm597_vm1, %v5309_v12  ;;  %v5659_v12 = vmov 0.0  }
 0x888   :  { %3747 = vmatprep.mubr.msk.f32.mxu1 %vm597_vm1, %v5318_v14  ;;  %3760 = vmatprep.mubr.msk.f32.mxu0 %vm4427_vm2, %v5659_v12 }
 0x88b   :  { %3748 = vmatmul.mubr.msk.f32.gmra.mrb[58].mxu1 %vm597_vm1, %v5327_v49 }
 0x88c   :  { %3750 = vmatprep.mubr.msk.f32.mxu1 %vm597_vm1, %v5336_v50 }
 0x88f   :  { %3751 = vmatmul.mubr.msk.f32.gmra.mrb[60].mxu1 %vm597_vm1, %v5345_v51 }
 0x890   :  { %3753 = vmatprep.mubr.msk.f32.mxu1 %vm597_vm1, %v5354_v21 }
 0x893   :  { %3754 = vmatmul.mubr.msk.f32.gmra.mrb[62].mxu1 %vm597_vm1, %v5363_v7 }
 0x95a   :  { %v3746_v14 = vpop.f32.mrb[56].mxu1 }
 0x95b   :  { %v2892_v49 = vadd.f32 %v3746_v14, %v5019_v0  ;;  %v2886_v22 = vpop.f32.mrb[57].mxu1 }
 0x95c   :  { %v2887_v50 = vadd.f32 %v2886_v22, %v5021_v35 }
 0x95d   :  { %v3292_v13 = vmul.f32 -1.442695, %v2892_v49 }
 0x95e   :  { %v3291_v26 = vmul.f32 -1.442695, %v2887_v50  ;;  %v3749_v51 = vpop.f32.mrb[58].mxu1 }
 0x95f   :  { %4343 = vpow2.f32 %v3292_v13  ;;  %v2902_v21 = vadd.f32 %v3749_v51, %v5023_v45  ;;  %v2896_v47 = vpop.f32.mrb[59].mxu1 }
 0x960   :  { %4345 = vpow2.f32 %v3291_v26  ;;  %v2897_v7 = vadd.f32 %v2896_v47, %v5029_v44 }
 0x961   :  { %v3294_v57 = vmul.f32 -1.442695, %v2902_v21 }
 0x962   :  { %v3293_v38 = vmul.f32 -1.442695, %v2897_v7  ;;  %v3752_v41 = vpop.f32.mrb[60].mxu1 }
 0x963   :  { %4347 = vpow2.f32 %v3294_v57  ;;  %v2906_v36 = vpop.f32.mrb[61].mxu1  ;;  %v2912_v0 = vadd.f32 %v3752_v41, %v5031_v15 }
 0x964   :  { %4349 = vpow2.f32 %v3293_v38  ;;  %v2907_v35 = vadd.f32 %v2906_v36, %v5039_v55 }
 0x965   :  { %4351 = vtanh.f32 %v2912_v0 }
 0x966   :  { %v3755_v48 = vpop.f32.mrb[62].mxu1  ;;  %4353 = vtanh.f32 %v2907_v35 }
 0x967   :  { %v2922_v17 = vadd.f32 %v3755_v48, %v5042_v5  ;;  %v2916_v61 = vpop.f32.mrb[63].mxu1 }
 0x968   :  { %v2917_v45 = vadd.f32 %v2916_v61, %v5048_v56 }
 0x969   :  { %v4344_v40 = vpop.eup %4343  ;;  %v3296_v46 = vmul.f32 -1.442695, %v2922_v17 }
 0x96a   :  { %v4346_v44 = vpop.eup %4345  ;;  %v2932_v6 = vadd.f32 1.0, %v4344_v40  ;;  %v3295_v3 = vmul.f32 -1.442695, %v2917_v45 }
 0x96b   :  { %v2931_v32 = vadd.f32 1.0, %v4346_v44  ;;  %4355 = vpow2.f32 %v3296_v46 }
 0x96c   :  { %4357 = vrcp.f32 %v2932_v6 }
 0x96d   :  { %v4348_v62 = vpop.eup %4347  ;;  %4359 = vrcp.f32 %v2931_v32 }
 0x96e   :  { %v4350_v15 = vpop.eup %4349  ;;  %v2944_v55 = vadd.f32 1.0, %v4348_v62  ;;  %4361 = vpow2.f32 %v3295_v3 }
 0x96f   :  { %v2943_v39 = vadd.f32 1.0, %v4350_v15  ;;  %v4352_v5 = vpop.eup %4351 }
 0x970   :  { %4363 = vrcp.f32 %v2944_v55  ;;  %v4354_v56 = vpop.eup %4353 }
 0x971   :  { %4365 = vrcp.f32 %v2943_v39 }
 0x975   :  { %v4356_v24 = vpop.eup %4355 }
 0x976   :  { %v4358_v25 = vpop.eup %4357  ;;  %v2958_v58 = vadd.f32 1.0, %v4356_v24 }
 0x977   :  { %v4360_v18 = vpop.eup %4359  ;;  %v2966_v52 = vmul.f32 %v4358_v25, %v4352_v5 }
 0x978   :  { %v4362_v11 = vpop.eup %4361  ;;  %v2965_v31 = vmul.f32 %v4360_v18, %v4354_v56  ;;  %4367 = vrcp.f32 %v2958_v58 }
 0x979   :  { %v2957_v54 = vadd.f32 1.0, %v4362_v11 }
 0x97a   :  { %v4364_v33 = vpop.eup %4363 }
 0x97b   :  { %v4366_v19 = vpop.eup %4365  ;;  %v2964_v42 = vmul.f32 %v4364_v33, %v5531_v53  ;;  %4369 = vrcp.f32 %v2957_v54  ;;  %v2973_v53 = vld [vmem:[%s5585_s6] sm:$0x1] }
 0x97c   :  { %v2963_v43 = vmul.f32 %v4366_v19, %v5534_v16  ;;  %v2978_v16 = vpop.permute.xlu0 %2977 }
 0x97d   :  { %v2968_v29 = vadd.f32 %v2966_v52, %v2964_v42  ;;  %v2983_v27 = vrot.slane %v2978_v16, %v5660_v59 }
 0x97e   :  { %v2967_v2 = vadd.f32 %v2965_v31, %v2963_v43 }
 0x97f   :  { %4371 = vtanh.f32 %v2968_v29 }
 0x980   :  { %4373 = vtanh.f32 %v2967_v2 }
 0x982   :  { %v4368_v63 = vpop.eup %4367 }
 0x985   :  { %v4370_v4 = vpop.eup %4369 }
 0x989   :  { %v4372_v8 = vpop.eup %4371 }
 0x98a   :  { %v4374_v9 = vpop.eup %4373  ;;  %v2972_v30 = vmul.f32 %v4372_v8, %v4368_v63 }
 0x98b   :  { %v2971_v10 = vmul.f32 %v4374_v9, %v4370_v4 }
 0x98d   :  { %v3852_v60 = vpack.c.bf16 %v2972_v30, %v2971_v10 }
 0x98f   :  { %3853 = vmatpush3.bf16.msra.mxu0 %v3852_v60 }
 0x992   :  { %3761 = vmatmul.mubr.msk.f32.vlgmr.msra.gmra.mrb[64].mxu0 %vm371_vm0, %v2973_v53 }
 0xa65   :  { %v3053_v34 = vpop.f32.mrb[64].mxu0 }
 0xa66   :  { %v3054_v23 = vadd.f32 %v3053_v34, %v2983_v27  ;;  %v3762_v20 = vpop.f32.mrb[65].mxu0 }
 0xa68   :  { %3058 = vst.msk [vmem:[#allocation3] sm:$0x1] %vm3057_vm3, %v3054_v23 }
 0xa69   :  { %4410 = shalt.err (!%p4407_p4)
}
 0xa6a   :  { %s4411_s13 = scalar_lea.hbm %s5587_s8, 16 }
 0xa6b   :  { %p4412_p5 = scmp.ne.s32.totalorder %s5587_s8, %s4411_s13  ;;  %p4415_p6 = scmp.lt.u32.totalorder %s4411_s13, %s5587_s8 }
 0xa6d   :  { %p4417_p7 = pnand %p4415_p6, %p4412_p5 }
 0xa6f   :  { %4420 = shalt.err (!%p4417_p7)
}
 0xa70   :  { %3068 = dma.vmem_to_hbm [thread:$0]  %s3066_s10, 16, %s5587_s8, [#allocation4]  }
 0xa71   :  { %4421 = dma.done.wait [#allocation4], 16  }
 0xa72   :  { %4422 = vsyncadd [#allocation4], 4294967280 }
 0xa73   :  { %3072 = vsyncpa [#allocation4], 1 }

</bundles_post_ra>
